<compile_context>
chip_gen: v7x
topology: tpu7x:2x2x1
jax: 0.10.0
libtpu: 0.0.40
codegen_flags: <defaults>
</compile_context>

<pallas_src>
import functools
from math import sqrt

import jax
import jax.numpy as jnp
from jax import lax
from jax.experimental import pallas as pl
from jax.experimental.pallas import tpu as pltpu

# ----- small, module-consistent shapes -----
BATCH = 2
LENGTH_X = 8
LENGTH_Y = 8
DIM_IN_X = 48
DIM_IN_Y = 24
NUM_HEADS = 4
DIM_K = 32          # divisible by NUM_HEADS
DIM_V = 32          # divisible by NUM_HEADS
FC1, FC2, FC3, FC4 = 192, 32, 8, 2
BN_EPS = 1e-5


# ---------------------------------------------------------------------------
# Single fused kernel: contrastive multi-head attention -> flatten -> MLP head
# ---------------------------------------------------------------------------
def _fused_kernel(x_ref, y_ref, wq_ref, wkv_ref,
                  w1_ref, b1_ref, w2_ref, b2_ref, w3_ref, b3_ref,
                  w4_ref, b4_ref, o_ref,
                  *, batch, n_x, l_y, num_heads, dk, dv, dim_k, norm_fact):
    x = x_ref[...]                                                    # (B*Lx, Dx)
    y = y_ref[...]                                                    # (B*Ly, Dy)

    # Batch folded into rows; K and V projections fused into one matmul.
    q = jnp.dot(x, wq_ref[...], preferred_element_type=jnp.float32)   # (B*Lx, dim_k)
    kv = jnp.dot(y, wkv_ref[...], preferred_element_type=jnp.float32)  # (B*Ly, dim_k+dim_v)

    flat_rows = []
    for b in range(batch):                     # static loops (B=2, H=4)
        head_outs = []
        for h in range(num_heads):
            qh = q[b * n_x:(b + 1) * n_x, h * dk:(h + 1) * dk]        # (Lx, dk)
            kh = kv[b * l_y:(b + 1) * l_y, h * dk:(h + 1) * dk]       # (Ly, dk)
            vh = kv[b * l_y:(b + 1) * l_y,
                    dim_k + h * dv: dim_k + (h + 1) * dv]             # (Ly, dv)
            # scores = qh @ kh^T without materializing the transpose
            s = lax.dot_general(qh, kh, (((1,), (1,)), ((), ())),
                                preferred_element_type=jnp.float32) * norm_fact
            p = jax.nn.softmax(s, axis=-1)
            # softmax(1 - p) == softmax(-p)  (row-wise shift invariance)
            p = jax.nn.softmax(-p, axis=-1)
            # dropout(p=0.1) is identity at inference
            oh = qh + jnp.dot(p, vh, preferred_element_type=jnp.float32)   # (Lx, dv)
            head_outs.append(oh)
        att_b = jnp.concatenate(head_outs, axis=1)                    # (Lx, dim_v)
        # flatten (Lx, dim_v) -> (1, Lx*dim_v): lane-dense row, matches
        # transpose(1,2).reshape(batch, n_x, dim_v).reshape(batch, -1)
        flat_rows.append(
            jnp.concatenate([att_b[l:l + 1, :] for l in range(n_x)], axis=1))
    att_flat = jnp.concatenate(flat_rows, axis=0)                     # (B, Lx*dim_v)

    # MLP head; BatchNorm (eval) already folded into w2/b2, w3/b3, w4/b4.
    # F.dropout(p=0.4) -> identity for deterministic inference.
    h1 = jnp.dot(att_flat, w1_ref[...], preferred_element_type=jnp.float32) + b1_ref[...]
    h1 = jnp.maximum(h1, 0.0)
    h2 = jnp.dot(h1, w2_ref[...], preferred_element_type=jnp.float32) + b2_ref[...]
    h2 = jnp.maximum(h2, 0.0)
    h3 = jnp.dot(h2, w3_ref[...], preferred_element_type=jnp.float32) + b3_ref[...]
    h3 = jnp.maximum(h3, 0.0)
    o_ref[...] = jnp.dot(h3, w4_ref[...], preferred_element_type=jnp.float32) + b4_ref[...]


def contrastive_attention_network(x, y, params, *, num_heads=NUM_HEADS):
    """Fused forward pass: (B, Lx, Dx), (B, Ly, Dy) -> (B, 2)."""
    (wq, wk, wv, w1, b1, w2, b2, w3, b3, w4, b4) = params
    batch, n_x, d_x = x.shape
    _, l_y, d_y = y.shape
    dim_k = wq.shape[1]
    dim_v = wv.shape[1]
    dk = dim_k // num_heads
    dv = dim_v // num_heads

    # Free XLA-side reshapes (contiguous): fold batch into rows for the kernel.
    x2 = x.reshape(batch * n_x, d_x)
    y2 = y.reshape(batch * l_y, d_y)
    # Fuse K and V projection weights (both consume y) into one matmul operand.
    wkv = jnp.concatenate([wk, wv], axis=1)                       # (Dy, dim_k+dim_v)

    kernel = functools.partial(
        _fused_kernel, batch=batch, n_x=n_x, l_y=l_y,
        num_heads=num_heads, dk=dk, dv=dv, dim_k=dim_k, norm_fact=1.0 / sqrt(dk))

    vmem_spec = functools.partial(pl.BlockSpec, memory_space=pltpu.MemorySpace.VMEM)
    n_inputs = 12
    return pl.pallas_call(
        kernel,
        out_shape=jax.ShapeDtypeStruct((batch, w4.shape[1]), jnp.float32),
        in_specs=[vmem_spec() for _ in range(n_inputs)],
        out_specs=vmem_spec(),
    )(x2, y2, wq, wkv, w1, b1, w2, b2, w3, b3, w4, b4)


# ---------------------------------------------------------------------------
# Parameter init (PyTorch-style uniform(+-1/sqrt(fan_in))) + BN folding
# ---------------------------------------------------------------------------
def _linear(key, fan_in, fan_out, bias=True):
    bound = 1.0 / sqrt(fan_in)
    kw, kb = jax.random.split(key)
    w = jax.random.uniform(kw, (fan_in, fan_out), jnp.float32, -bound, bound)
    if not bias:
        return w
    b = jax.random.uniform(kb, (1, fan_out), jnp.float32, -bound, bound)
    return w, b


def build_raw_params(key):
    keys = jax.random.split(key, 8)
    wq = _linear(keys[0], DIM_IN_X, DIM_K, bias=False)
    wk = _linear(keys[1], DIM_IN_Y, DIM_K, bias=False)
    wv = _linear(keys[2], DIM_IN_Y, DIM_V, bias=False)

    fc_dim1 = DIM_V * LENGTH_X
    w1, b1 = _linear(keys[3], fc_dim1, FC1)
    w2, b2 = _linear(keys[4], FC1, FC2)
    w3, b3 = _linear(keys[5], FC2, FC3)
    w4, b4 = _linear(keys[6], FC3, FC4)

    def bn(n):  # BatchNorm1d defaults: gamma=1, beta=0, mean=0, var=1 (eval mode)
        return (jnp.ones((n,), jnp.float32), jnp.zeros((n,), jnp.float32),
                jnp.zeros((n,), jnp.float32), jnp.ones((n,), jnp.float32))

    return dict(wq=wq, wk=wk, wv=wv,
                w1=w1, b1=b1, w2=w2, b2=b2, w3=w3, b3=b3, w4=w4, b4=b4,
                bn1=bn(FC1), bn2=bn(FC2), bn3=bn(FC3))


def _bn_scale_shift(gamma, beta, mean, var, eps=BN_EPS):
    scale = gamma / jnp.sqrt(var + eps)
    return scale, beta - mean * scale


def fold_params(raw):
    """Fold eval-mode BatchNorm (applied after ReLU) into the next linear layer:
       (relu(h)*s + t) @ W + b == relu(h) @ (diag(s) @ W) + (t @ W + b)."""
    s1, t1 = _bn_scale_shift(*raw["bn1"])
    s2, t2 = _bn_scale_shift(*raw["bn2"])
    s3, t3 = _bn_scale_shift(*raw["bn3"])
    w2f = raw["w2"] * s1[:, None]
    b2f = raw["b2"] + t1[None, :] @ raw["w2"]
    w3f = raw["w3"] * s2[:, None]
    b3f = raw["b3"] + t2[None, :] @ raw["w3"]
    w4f = raw["w4"] * s3[:, None]
    b4f = raw["b4"] + t3[None, :] @ raw["w4"]
    return (raw["wq"], raw["wk"], raw["wv"],
            raw["w1"], raw["b1"], w2f, b2f, w3f, b3f, w4f, b4f)


# ---------------------------------------------------------------------------
# Pure-JAX reference (unfolded, follows the PyTorch module step by step)
# ---------------------------------------------------------------------------
def forward_ref(x, y, raw):
    wq, wk, wv = raw["wq"], raw["wk"], raw["wv"]
    b, n_x, _ = x.shape
    l_y = y.shape[1]
    dk = DIM_K // NUM_HEADS
    dv = DIM_V // NUM_HEADS
    q = (x @ wq).reshape(b, n_x, NUM_HEADS, dk).transpose(0, 2, 1, 3)
    k = (y @ wk).reshape(b, l_y, NUM_HEADS, dk).transpose(0, 2, 1, 3)
    v = (y @ wv).reshape(b, l_y, NUM_HEADS, dv).transpose(0, 2, 1, 3)
    dist = jnp.einsum("bhqd,bhkd->bhqk", q, k) / sqrt(dk)
    dist = jax.nn.softmax(dist, axis=-1)
    dist = jax.nn.softmax(1.0 - dist, axis=-1)      # spec form (== softmax(-dist))
    att = q + jnp.einsum("bhqk,bhkd->bhqd", dist, v)
    att = att.transpose(0, 2, 1, 3).reshape(b, n_x, DIM_V)
    h = att.reshape(b, -1)

    def bn_eval(z, p):
        gamma, beta, mean, var = p
        return (z - mean) / jnp.sqrt(var + BN_EPS) * gamma + beta

    h = bn_eval(jnp.maximum(h @ raw["w1"] + raw["b1"], 0.0), raw["bn1"])
    h = bn_eval(jnp.maximum(h @ raw["w2"] + raw["b2"], 0.0), raw["bn2"])
    h = bn_eval(jnp.maximum(h @ raw["w3"] + raw["b3"], 0.0), raw["bn3"])
    return h @ raw["w4"] + raw["b4"]


if __name__ == "__main__":
    key = jax.random.PRNGKey(0)
    kx, ky, kp = jax.random.split(key, 3)
    x = jax.random.normal(kx, (BATCH, LENGTH_X, DIM_IN_X), jnp.float32)
    y = jax.random.normal(ky, (BATCH, LENGTH_Y, DIM_IN_Y), jnp.float32)

    raw = build_raw_params(kp)
    params = fold_params(raw)

    fwd = jax.jit(contrastive_attention_network)
    out = jax.block_until_ready(fwd(x, y, params))

    ref = forward_ref(x, y, raw)
    assert out.shape == (BATCH, FC4), out.shape
    assert jnp.allclose(out, ref, rtol=1e-4, atol=1e-4), (out, ref)
    print("KERNEL_OK")
</pallas_src>

<mosaic_0001>
module attributes {stable_mosaic.version = 11 : i64} {
  func.func @_fused_kernel(%arg0: memref<16x48xf32, #tpu.memory_space<vmem>>, %arg1: memref<16x24xf32, #tpu.memory_space<vmem>>, %arg2: memref<48x32xf32, #tpu.memory_space<vmem>>, %arg3: memref<24x64xf32, #tpu.memory_space<vmem>>, %arg4: memref<256x192xf32, #tpu.memory_space<vmem>>, %arg5: memref<1x192xf32, #tpu.memory_space<vmem>>, %arg6: memref<192x32xf32, #tpu.memory_space<vmem>>, %arg7: memref<1x32xf32, #tpu.memory_space<vmem>>, %arg8: memref<32x8xf32, #tpu.memory_space<vmem>>, %arg9: memref<1x8xf32, #tpu.memory_space<vmem>>, %arg10: memref<8x2xf32, #tpu.memory_space<vmem>>, %arg11: memref<1x2xf32, #tpu.memory_space<vmem>>, %arg12: memref<2x2xf32, #tpu.memory_space<vmem>>) attributes {dimension_semantics = [], scalar_prefetch = 0 : i64, scratch_operands = 0 : i64, tpu.core_type = #tpu.core_type<tc>} {
    %c0 = arith.constant 0 : index
    %c0_0 = arith.constant 0 : index
    %0 = vector.load %arg0[%c0, %c0_0] : memref<16x48xf32, #tpu.memory_space<vmem>>, vector<16x48xf32>
    %c0_1 = arith.constant 0 : index
    %c0_2 = arith.constant 0 : index
    %1 = vector.load %arg1[%c0_1, %c0_2] : memref<16x24xf32, #tpu.memory_space<vmem>>, vector<16x24xf32>
    %c0_3 = arith.constant 0 : index
    %c0_4 = arith.constant 0 : index
    %2 = vector.load %arg2[%c0_3, %c0_4] : memref<48x32xf32, #tpu.memory_space<vmem>>, vector<48x32xf32>
    %cst = arith.constant dense<0.000000e+00> : vector<16x32xf32>
    %3 = tpu.matmul %0, %2, %cst {dimension_numbers = #tpu.dot_dimension_numbers<[1], [0], [0], [1], [0, 0, 1, 1], [], []>} : vector<16x48xf32>, vector<48x32xf32>, vector<16x32xf32> -> vector<16x32xf32>
    %c0_5 = arith.constant 0 : index
    %c0_6 = arith.constant 0 : index
    %4 = vector.load %arg3[%c0_5, %c0_6] : memref<24x64xf32, #tpu.memory_space<vmem>>, vector<24x64xf32>
    %cst_7 = arith.constant dense<0.000000e+00> : vector<16x64xf32>
    %5 = tpu.matmul %1, %4, %cst_7 {dimension_numbers = #tpu.dot_dimension_numbers<[1], [0], [0], [1], [0, 0, 1, 1], [], []>} : vector<16x24xf32>, vector<24x64xf32>, vector<16x64xf32> -> vector<16x64xf32>
    %6 = vector.extract_strided_slice %3 {offsets = [0, 0], sizes = [8, 8], strides = [1, 1]} : vector<16x32xf32> to vector<8x8xf32>
    %7 = vector.extract_strided_slice %5 {offsets = [0, 0], sizes = [8, 8], strides = [1, 1]} : vector<16x64xf32> to vector<8x8xf32>
    %8 = vector.extract_strided_slice %5 {offsets = [0, 32], sizes = [8, 8], strides = [1, 1]} : vector<16x64xf32> to vector<8x8xf32>
    %cst_8 = arith.constant dense<0.000000e+00> : vector<8x8xf32>
    %9 = tpu.matmul %6, %7, %cst_8 {dimension_numbers = #tpu.dot_dimension_numbers<[1], [1], [0], [0], [0, 0, 1, 0], [], []>} : vector<8x8xf32>, vector<8x8xf32>, vector<8x8xf32> -> vector<8x8xf32>
    %cst_9 = arith.constant 0.353553385 : f32
    %10 = vector.broadcast %cst_9 : f32 to vector<8x8xf32>
    %11 = arith.mulf %9, %10 : vector<8x8xf32>
    %cst_10 = arith.constant dense<0xFF800000> : vector<8xf32>
    %12 = vector.multi_reduction <maximumf>, %11, %cst_10 [1] : vector<8x8xf32> to vector<8xf32>
    %cst_11 = arith.constant 0xFF800000 : f32
    %13 = vector.broadcast %cst_11 : f32 to vector<8xf32>
    %14 = arith.maximumf %13, %12 : vector<8xf32>
    %15 = vector.shape_cast %14 : vector<8xf32> to vector<8x1xf32>
    %16 = vector.broadcast %15 : vector<8x1xf32> to vector<8x8xf32>
    %17 = arith.subf %11, %16 : vector<8x8xf32>
    %18 = math.exp %17 : vector<8x8xf32>
    %cst_12 = arith.constant dense<0.000000e+00> : vector<8xf32>
    %19 = vector.multi_reduction <add>, %18, %cst_12 [1] : vector<8x8xf32> to vector<8xf32>
    %20 = vector.shape_cast %19 : vector<8xf32> to vector<8x1xf32>
    %21 = vector.broadcast %20 : vector<8x1xf32> to vector<8x8xf32>
    %22 = arith.divf %18, %21 : vector<8x8xf32>
    %cst_13 = arith.constant 0.000000e+00 : f32
    %23 = vector.broadcast %cst_13 : f32 to vector<8x8xf32>
    %24 = arith.subf %23, %22 : vector<8x8xf32>
    %cst_14 = arith.constant dense<0xFF800000> : vector<8xf32>
    %25 = vector.multi_reduction <maximumf>, %24, %cst_14 [1] : vector<8x8xf32> to vector<8xf32>
    %cst_15 = arith.constant 0xFF800000 : f32
    %26 = vector.broadcast %cst_15 : f32 to vector<8xf32>
    %27 = arith.maximumf %26, %25 : vector<8xf32>
    %28 = vector.shape_cast %27 : vector<8xf32> to vector<8x1xf32>
    %29 = vector.broadcast %28 : vector<8x1xf32> to vector<8x8xf32>
    %30 = arith.subf %24, %29 : vector<8x8xf32>
    %31 = math.exp %30 : vector<8x8xf32>
    %cst_16 = arith.constant dense<0.000000e+00> : vector<8xf32>
    %32 = vector.multi_reduction <add>, %31, %cst_16 [1] : vector<8x8xf32> to vector<8xf32>
    %33 = vector.shape_cast %32 : vector<8xf32> to vector<8x1xf32>
    %34 = vector.broadcast %33 : vector<8x1xf32> to vector<8x8xf32>
    %35 = arith.divf %31, %34 : vector<8x8xf32>
    %cst_17 = arith.constant dense<0.000000e+00> : vector<8x8xf32>
    %36 = tpu.matmul %35, %8, %cst_17 {dimension_numbers = #tpu.dot_dimension_numbers<[1], [0], [0], [1], [0, 0, 1, 1], [], []>} : vector<8x8xf32>, vector<8x8xf32>, vector<8x8xf32> -> vector<8x8xf32>
    %37 = arith.addf %6, %36 : vector<8x8xf32>
    %38 = vector.extract_strided_slice %3 {offsets = [0, 8], sizes = [8, 8], strides = [1, 1]} : vector<16x32xf32> to vector<8x8xf32>
    %39 = vector.extract_strided_slice %5 {offsets = [0, 8], sizes = [8, 8], strides = [1, 1]} : vector<16x64xf32> to vector<8x8xf32>
    %40 = vector.extract_strided_slice %5 {offsets = [0, 40], sizes = [8, 8], strides = [1, 1]} : vector<16x64xf32> to vector<8x8xf32>
    %cst_18 = arith.constant dense<0.000000e+00> : vector<8x8xf32>
    %41 = tpu.matmul %38, %39, %cst_18 {dimension_numbers = #tpu.dot_dimension_numbers<[1], [1], [0], [0], [0, 0, 1, 0], [], []>} : vector<8x8xf32>, vector<8x8xf32>, vector<8x8xf32> -> vector<8x8xf32>
    %cst_19 = arith.constant 0.353553385 : f32
    %42 = vector.broadcast %cst_19 : f32 to vector<8x8xf32>
    %43 = arith.mulf %41, %42 : vector<8x8xf32>
    %cst_20 = arith.constant dense<0xFF800000> : vector<8xf32>
    %44 = vector.multi_reduction <maximumf>, %43, %cst_20 [1] : vector<8x8xf32> to vector<8xf32>
    %cst_21 = arith.constant 0xFF800000 : f32
    %45 = vector.broadcast %cst_21 : f32 to vector<8xf32>
    %46 = arith.maximumf %45, %44 : vector<8xf32>
    %47 = vector.shape_cast %46 : vector<8xf32> to vector<8x1xf32>
    %48 = vector.broadcast %47 : vector<8x1xf32> to vector<8x8xf32>
    %49 = arith.subf %43, %48 : vector<8x8xf32>
    %50 = math.exp %49 : vector<8x8xf32>
    %cst_22 = arith.constant dense<0.000000e+00> : vector<8xf32>
    %51 = vector.multi_reduction <add>, %50, %cst_22 [1] : vector<8x8xf32> to vector<8xf32>
    %52 = vector.shape_cast %51 : vector<8xf32> to vector<8x1xf32>
    %53 = vector.broadcast %52 : vector<8x1xf32> to vector<8x8xf32>
    %54 = arith.divf %50, %53 : vector<8x8xf32>
    %cst_23 = arith.constant 0.000000e+00 : f32
    %55 = vector.broadcast %cst_23 : f32 to vector<8x8xf32>
    %56 = arith.subf %55, %54 : vector<8x8xf32>
    %cst_24 = arith.constant dense<0xFF800000> : vector<8xf32>
    %57 = vector.multi_reduction <maximumf>, %56, %cst_24 [1] : vector<8x8xf32> to vector<8xf32>
    %cst_25 = arith.constant 0xFF800000 : f32
    %58 = vector.broadcast %cst_25 : f32 to vector<8xf32>
    %59 = arith.maximumf %58, %57 : vector<8xf32>
    %60 = vector.shape_cast %59 : vector<8xf32> to vector<8x1xf32>
    %61 = vector.broadcast %60 : vector<8x1xf32> to vector<8x8xf32>
    %62 = arith.subf %56, %61 : vector<8x8xf32>
    %63 = math.exp %62 : vector<8x8xf32>
    %cst_26 = arith.constant dense<0.000000e+00> : vector<8xf32>
    %64 = vector.multi_reduction <add>, %63, %cst_26 [1] : vector<8x8xf32> to vector<8xf32>
    %65 = vector.shape_cast %64 : vector<8xf32> to vector<8x1xf32>
    %66 = vector.broadcast %65 : vector<8x1xf32> to vector<8x8xf32>
    %67 = arith.divf %63, %66 : vector<8x8xf32>
    %cst_27 = arith.constant dense<0.000000e+00> : vector<8x8xf32>
    %68 = tpu.matmul %67, %40, %cst_27 {dimension_numbers = #tpu.dot_dimension_numbers<[1], [0], [0], [1], [0, 0, 1, 1], [], []>} : vector<8x8xf32>, vector<8x8xf32>, vector<8x8xf32> -> vector<8x8xf32>
    %69 = arith.addf %38, %68 : vector<8x8xf32>
    %70 = vector.extract_strided_slice %3 {offsets = [0, 16], sizes = [8, 8], strides = [1, 1]} : vector<16x32xf32> to vector<8x8xf32>
    %71 = vector.extract_strided_slice %5 {offsets = [0, 16], sizes = [8, 8], strides = [1, 1]} : vector<16x64xf32> to vector<8x8xf32>
    %72 = vector.extract_strided_slice %5 {offsets = [0, 48], sizes = [8, 8], strides = [1, 1]} : vector<16x64xf32> to vector<8x8xf32>
    %cst_28 = arith.constant dense<0.000000e+00> : vector<8x8xf32>
    %73 = tpu.matmul %70, %71, %cst_28 {dimension_numbers = #tpu.dot_dimension_numbers<[1], [1], [0], [0], [0, 0, 1, 0], [], []>} : vector<8x8xf32>, vector<8x8xf32>, vector<8x8xf32> -> vector<8x8xf32>
    %cst_29 = arith.constant 0.353553385 : f32
    %74 = vector.broadcast %cst_29 : f32 to vector<8x8xf32>
    %75 = arith.mulf %73, %74 : vector<8x8xf32>
    %cst_30 = arith.constant dense<0xFF800000> : vector<8xf32>
    %76 = vector.multi_reduction <maximumf>, %75, %cst_30 [1] : vector<8x8xf32> to vector<8xf32>
    %cst_31 = arith.constant 0xFF800000 : f32
    %77 = vector.broadcast %cst_31 : f32 to vector<8xf32>
    %78 = arith.maximumf %77, %76 : vector<8xf32>
    %79 = vector.shape_cast %78 : vector<8xf32> to vector<8x1xf32>
    %80 = vector.broadcast %79 : vector<8x1xf32> to vector<8x8xf32>
    %81 = arith.subf %75, %80 : vector<8x8xf32>
    %82 = math.exp %81 : vector<8x8xf32>
    %cst_32 = arith.constant dense<0.000000e+00> : vector<8xf32>
    %83 = vector.multi_reduction <add>, %82, %cst_32 [1] : vector<8x8xf32> to vector<8xf32>
    %84 = vector.shape_cast %83 : vector<8xf32> to vector<8x1xf32>
    %85 = vector.broadcast %84 : vector<8x1xf32> to vector<8x8xf32>
    %86 = arith.divf %82, %85 : vector<8x8xf32>
    %cst_33 = arith.constant 0.000000e+00 : f32
    %87 = vector.broadcast %cst_33 : f32 to vector<8x8xf32>
    %88 = arith.subf %87, %86 : vector<8x8xf32>
    %cst_34 = arith.constant dense<0xFF800000> : vector<8xf32>
    %89 = vector.multi_reduction <maximumf>, %88, %cst_34 [1] : vector<8x8xf32> to vector<8xf32>
    %cst_35 = arith.constant 0xFF800000 : f32
    %90 = vector.broadcast %cst_35 : f32 to vector<8xf32>
    %91 = arith.maximumf %90, %89 : vector<8xf32>
    %92 = vector.shape_cast %91 : vector<8xf32> to vector<8x1xf32>
    %93 = vector.broadcast %92 : vector<8x1xf32> to vector<8x8xf32>
    %94 = arith.subf %88, %93 : vector<8x8xf32>
    %95 = math.exp %94 : vector<8x8xf32>
    %cst_36 = arith.constant dense<0.000000e+00> : vector<8xf32>
    %96 = vector.multi_reduction <add>, %95, %cst_36 [1] : vector<8x8xf32> to vector<8xf32>
    %97 = vector.shape_cast %96 : vector<8xf32> to vector<8x1xf32>
    %98 = vector.broadcast %97 : vector<8x1xf32> to vector<8x8xf32>
    %99 = arith.divf %95, %98 : vector<8x8xf32>
    %cst_37 = arith.constant dense<0.000000e+00> : vector<8x8xf32>
    %100 = tpu.matmul %99, %72, %cst_37 {dimension_numbers = #tpu.dot_dimension_numbers<[1], [0], [0], [1], [0, 0, 1, 1], [], []>} : vector<8x8xf32>, vector<8x8xf32>, vector<8x8xf32> -> vector<8x8xf32>
    %101 = arith.addf %70, %100 : vector<8x8xf32>
    %102 = vector.extract_strided_slice %3 {offsets = [0, 24], sizes = [8, 8], strides = [1, 1]} : vector<16x32xf32> to vector<8x8xf32>
    %103 = vector.extract_strided_slice %5 {offsets = [0, 24], sizes = [8, 8], strides = [1, 1]} : vector<16x64xf32> to vector<8x8xf32>
    %104 = vector.extract_strided_slice %5 {offsets = [0, 56], sizes = [8, 8], strides = [1, 1]} : vector<16x64xf32> to vector<8x8xf32>
    %cst_38 = arith.constant dense<0.000000e+00> : vector<8x8xf32>
    %105 = tpu.matmul %102, %103, %cst_38 {dimension_numbers = #tpu.dot_dimension_numbers<[1], [1], [0], [0], [0, 0, 1, 0], [], []>} : vector<8x8xf32>, vector<8x8xf32>, vector<8x8xf32> -> vector<8x8xf32>
    %cst_39 = arith.constant 0.353553385 : f32
    %106 = vector.broadcast %cst_39 : f32 to vector<8x8xf32>
    %107 = arith.mulf %105, %106 : vector<8x8xf32>
    %cst_40 = arith.constant dense<0xFF800000> : vector<8xf32>
    %108 = vector.multi_reduction <maximumf>, %107, %cst_40 [1] : vector<8x8xf32> to vector<8xf32>
    %cst_41 = arith.constant 0xFF800000 : f32
    %109 = vector.broadcast %cst_41 : f32 to vector<8xf32>
    %110 = arith.maximumf %109, %108 : vector<8xf32>
    %111 = vector.shape_cast %110 : vector<8xf32> to vector<8x1xf32>
    %112 = vector.broadcast %111 : vector<8x1xf32> to vector<8x8xf32>
    %113 = arith.subf %107, %112 : vector<8x8xf32>
    %114 = math.exp %113 : vector<8x8xf32>
    %cst_42 = arith.constant dense<0.000000e+00> : vector<8xf32>
    %115 = vector.multi_reduction <add>, %114, %cst_42 [1] : vector<8x8xf32> to vector<8xf32>
    %116 = vector.shape_cast %115 : vector<8xf32> to vector<8x1xf32>
    %117 = vector.broadcast %116 : vector<8x1xf32> to vector<8x8xf32>
    %118 = arith.divf %114, %117 : vector<8x8xf32>
    %cst_43 = arith.constant 0.000000e+00 : f32
    %119 = vector.broadcast %cst_43 : f32 to vector<8x8xf32>
    %120 = arith.subf %119, %118 : vector<8x8xf32>
    %cst_44 = arith.constant dense<0xFF800000> : vector<8xf32>
    %121 = vector.multi_reduction <maximumf>, %120, %cst_44 [1] : vector<8x8xf32> to vector<8xf32>
    %cst_45 = arith.constant 0xFF800000 : f32
    %122 = vector.broadcast %cst_45 : f32 to vector<8xf32>
    %123 = arith.maximumf %122, %121 : vector<8xf32>
    %124 = vector.shape_cast %123 : vector<8xf32> to vector<8x1xf32>
    %125 = vector.broadcast %124 : vector<8x1xf32> to vector<8x8xf32>
    %126 = arith.subf %120, %125 : vector<8x8xf32>
    %127 = math.exp %126 : vector<8x8xf32>
    %cst_46 = arith.constant dense<0.000000e+00> : vector<8xf32>
    %128 = vector.multi_reduction <add>, %127, %cst_46 [1] : vector<8x8xf32> to vector<8xf32>
    %129 = vector.shape_cast %128 : vector<8xf32> to vector<8x1xf32>
    %130 = vector.broadcast %129 : vector<8x1xf32> to vector<8x8xf32>
    %131 = arith.divf %127, %130 : vector<8x8xf32>
    %cst_47 = arith.constant dense<0.000000e+00> : vector<8x8xf32>
    %132 = tpu.matmul %131, %104, %cst_47 {dimension_numbers = #tpu.dot_dimension_numbers<[1], [0], [0], [1], [0, 0, 1, 1], [], []>} : vector<8x8xf32>, vector<8x8xf32>, vector<8x8xf32> -> vector<8x8xf32>
    %133 = arith.addf %102, %132 : vector<8x8xf32>
    %134 = tpu.concatenate %37, %69, %101, %133 in 1 : vector<8x8xf32>, vector<8x8xf32>, vector<8x8xf32>, vector<8x8xf32> -> vector<8x32xf32>
    %135 = vector.extract_strided_slice %134 {offsets = [0, 0], sizes = [1, 32], strides = [1, 1]} : vector<8x32xf32> to vector<1x32xf32>
    %136 = vector.extract_strided_slice %134 {offsets = [1, 0], sizes = [1, 32], strides = [1, 1]} : vector<8x32xf32> to vector<1x32xf32>
    %137 = vector.extract_strided_slice %134 {offsets = [2, 0], sizes = [1, 32], strides = [1, 1]} : vector<8x32xf32> to vector<1x32xf32>
    %138 = vector.extract_strided_slice %134 {offsets = [3, 0], sizes = [1, 32], strides = [1, 1]} : vector<8x32xf32> to vector<1x32xf32>
    %139 = vector.extract_strided_slice %134 {offsets = [4, 0], sizes = [1, 32], strides = [1, 1]} : vector<8x32xf32> to vector<1x32xf32>
    %140 = vector.extract_strided_slice %134 {offsets = [5, 0], sizes = [1, 32], strides = [1, 1]} : vector<8x32xf32> to vector<1x32xf32>
    %141 = vector.extract_strided_slice %134 {offsets = [6, 0], sizes = [1, 32], strides = [1, 1]} : vector<8x32xf32> to vector<1x32xf32>
    %142 = vector.extract_strided_slice %134 {offsets = [7, 0], sizes = [1, 32], strides = [1, 1]} : vector<8x32xf32> to vector<1x32xf32>
    %143 = tpu.concatenate %135, %136, %137, %138, %139, %140, %141, %142 in 1 : vector<1x32xf32>, vector<1x32xf32>, vector<1x32xf32>, vector<1x32xf32>, vector<1x32xf32>, vector<1x32xf32>, vector<1x32xf32>, vector<1x32xf32> -> vector<1x256xf32>
    %144 = vector.extract_strided_slice %3 {offsets = [8, 0], sizes = [8, 8], strides = [1, 1]} : vector<16x32xf32> to vector<8x8xf32>
    %145 = vector.extract_strided_slice %5 {offsets = [8, 0], sizes = [8, 8], strides = [1, 1]} : vector<16x64xf32> to vector<8x8xf32>
    %146 = vector.extract_strided_slice %5 {offsets = [8, 32], sizes = [8, 8], strides = [1, 1]} : vector<16x64xf32> to vector<8x8xf32>
    %cst_48 = arith.constant dense<0.000000e+00> : vector<8x8xf32>
    %147 = tpu.matmul %144, %145, %cst_48 {dimension_numbers = #tpu.dot_dimension_numbers<[1], [1], [0], [0], [0, 0, 1, 0], [], []>} : vector<8x8xf32>, vector<8x8xf32>, vector<8x8xf32> -> vector<8x8xf32>
    %cst_49 = arith.constant 0.353553385 : f32
    %148 = vector.broadcast %cst_49 : f32 to vector<8x8xf32>
    %149 = arith.mulf %147, %148 : vector<8x8xf32>
    %cst_50 = arith.constant dense<0xFF800000> : vector<8xf32>
    %150 = vector.multi_reduction <maximumf>, %149, %cst_50 [1] : vector<8x8xf32> to vector<8xf32>
    %cst_51 = arith.constant 0xFF800000 : f32
    %151 = vector.broadcast %cst_51 : f32 to vector<8xf32>
    %152 = arith.maximumf %151, %150 : vector<8xf32>
    %153 = vector.shape_cast %152 : vector<8xf32> to vector<8x1xf32>
    %154 = vector.broadcast %153 : vector<8x1xf32> to vector<8x8xf32>
    %155 = arith.subf %149, %154 : vector<8x8xf32>
    %156 = math.exp %155 : vector<8x8xf32>
    %cst_52 = arith.constant dense<0.000000e+00> : vector<8xf32>
    %157 = vector.multi_reduction <add>, %156, %cst_52 [1] : vector<8x8xf32> to vector<8xf32>
    %158 = vector.shape_cast %157 : vector<8xf32> to vector<8x1xf32>
    %159 = vector.broadcast %158 : vector<8x1xf32> to vector<8x8xf32>
    %160 = arith.divf %156, %159 : vector<8x8xf32>
    %cst_53 = arith.constant 0.000000e+00 : f32
    %161 = vector.broadcast %cst_53 : f32 to vector<8x8xf32>
    %162 = arith.subf %161, %160 : vector<8x8xf32>
    %cst_54 = arith.constant dense<0xFF800000> : vector<8xf32>
    %163 = vector.multi_reduction <maximumf>, %162, %cst_54 [1] : vector<8x8xf32> to vector<8xf32>
    %cst_55 = arith.constant 0xFF800000 : f32
    %164 = vector.broadcast %cst_55 : f32 to vector<8xf32>
    %165 = arith.maximumf %164, %163 : vector<8xf32>
    %166 = vector.shape_cast %165 : vector<8xf32> to vector<8x1xf32>
    %167 = vector.broadcast %166 : vector<8x1xf32> to vector<8x8xf32>
    %168 = arith.subf %162, %167 : vector<8x8xf32>
    %169 = math.exp %168 : vector<8x8xf32>
    %cst_56 = arith.constant dense<0.000000e+00> : vector<8xf32>
    %170 = vector.multi_reduction <add>, %169, %cst_56 [1] : vector<8x8xf32> to vector<8xf32>
    %171 = vector.shape_cast %170 : vector<8xf32> to vector<8x1xf32>
    %172 = vector.broadcast %171 : vector<8x1xf32> to vector<8x8xf32>
    %173 = arith.divf %169, %172 : vector<8x8xf32>
    %cst_57 = arith.constant dense<0.000000e+00> : vector<8x8xf32>
    %174 = tpu.matmul %173, %146, %cst_57 {dimension_numbers = #tpu.dot_dimension_numbers<[1], [0], [0], [1], [0, 0, 1, 1], [], []>} : vector<8x8xf32>, vector<8x8xf32>, vector<8x8xf32> -> vector<8x8xf32>
    %175 = arith.addf %144, %174 : vector<8x8xf32>
    %176 = vector.extract_strided_slice %3 {offsets = [8, 8], sizes = [8, 8], strides = [1, 1]} : vector<16x32xf32> to vector<8x8xf32>
    %177 = vector.extract_strided_slice %5 {offsets = [8, 8], sizes = [8, 8], strides = [1, 1]} : vector<16x64xf32> to vector<8x8xf32>
    %178 = vector.extract_strided_slice %5 {offsets = [8, 40], sizes = [8, 8], strides = [1, 1]} : vector<16x64xf32> to vector<8x8xf32>
    %cst_58 = arith.constant dense<0.000000e+00> : vector<8x8xf32>
    %179 = tpu.matmul %176, %177, %cst_58 {dimension_numbers = #tpu.dot_dimension_numbers<[1], [1], [0], [0], [0, 0, 1, 0], [], []>} : vector<8x8xf32>, vector<8x8xf32>, vector<8x8xf32> -> vector<8x8xf32>
    %cst_59 = arith.constant 0.353553385 : f32
    %180 = vector.broadcast %cst_59 : f32 to vector<8x8xf32>
    %181 = arith.mulf %179, %180 : vector<8x8xf32>
    %cst_60 = arith.constant dense<0xFF800000> : vector<8xf32>
    %182 = vector.multi_reduction <maximumf>, %181, %cst_60 [1] : vector<8x8xf32> to vector<8xf32>
    %cst_61 = arith.constant 0xFF800000 : f32
    %183 = vector.broadcast %cst_61 : f32 to vector<8xf32>
    %184 = arith.maximumf %183, %182 : vector<8xf32>
    %185 = vector.shape_cast %184 : vector<8xf32> to vector<8x1xf32>
    %186 = vector.broadcast %185 : vector<8x1xf32> to vector<8x8xf32>
    %187 = arith.subf %181, %186 : vector<8x8xf32>
    %188 = math.exp %187 : vector<8x8xf32>
    %cst_62 = arith.constant dense<0.000000e+00> : vector<8xf32>
    %189 = vector.multi_reduction <add>, %188, %cst_62 [1] : vector<8x8xf32> to vector<8xf32>
    %190 = vector.shape_cast %189 : vector<8xf32> to vector<8x1xf32>
    %191 = vector.broadcast %190 : vector<8x1xf32> to vector<8x8xf32>
    %192 = arith.divf %188, %191 : vector<8x8xf32>
    %cst_63 = arith.constant 0.000000e+00 : f32
    %193 = vector.broadcast %cst_63 : f32 to vector<8x8xf32>
    %194 = arith.subf %193, %192 : vector<8x8xf32>
    %cst_64 = arith.constant dense<0xFF800000> : vector<8xf32>
    %195 = vector.multi_reduction <maximumf>, %194, %cst_64 [1] : vector<8x8xf32> to vector<8xf32>
    %cst_65 = arith.constant 0xFF800000 : f32
    %196 = vector.broadcast %cst_65 : f32 to vector<8xf32>
    %197 = arith.maximumf %196, %195 : vector<8xf32>
    %198 = vector.shape_cast %197 : vector<8xf32> to vector<8x1xf32>
    %199 = vector.broadcast %198 : vector<8x1xf32> to vector<8x8xf32>
    %200 = arith.subf %194, %199 : vector<8x8xf32>
    %201 = math.exp %200 : vector<8x8xf32>
    %cst_66 = arith.constant dense<0.000000e+00> : vector<8xf32>
    %202 = vector.multi_reduction <add>, %201, %cst_66 [1] : vector<8x8xf32> to vector<8xf32>
    %203 = vector.shape_cast %202 : vector<8xf32> to vector<8x1xf32>
    %204 = vector.broadcast %203 : vector<8x1xf32> to vector<8x8xf32>
    %205 = arith.divf %201, %204 : vector<8x8xf32>
    %cst_67 = arith.constant dense<0.000000e+00> : vector<8x8xf32>
    %206 = tpu.matmul %205, %178, %cst_67 {dimension_numbers = #tpu.dot_dimension_numbers<[1], [0], [0], [1], [0, 0, 1, 1], [], []>} : vector<8x8xf32>, vector<8x8xf32>, vector<8x8xf32> -> vector<8x8xf32>
    %207 = arith.addf %176, %206 : vector<8x8xf32>
    %208 = vector.extract_strided_slice %3 {offsets = [8, 16], sizes = [8, 8], strides = [1, 1]} : vector<16x32xf32> to vector<8x8xf32>
    %209 = vector.extract_strided_slice %5 {offsets = [8, 16], sizes = [8, 8], strides = [1, 1]} : vector<16x64xf32> to vector<8x8xf32>
    %210 = vector.extract_strided_slice %5 {offsets = [8, 48], sizes = [8, 8], strides = [1, 1]} : vector<16x64xf32> to vector<8x8xf32>
    %cst_68 = arith.constant dense<0.000000e+00> : vector<8x8xf32>
    %211 = tpu.matmul %208, %209, %cst_68 {dimension_numbers = #tpu.dot_dimension_numbers<[1], [1], [0], [0], [0, 0, 1, 0], [], []>} : vector<8x8xf32>, vector<8x8xf32>, vector<8x8xf32> -> vector<8x8xf32>
    %cst_69 = arith.constant 0.353553385 : f32
    %212 = vector.broadcast %cst_69 : f32 to vector<8x8xf32>
    %213 = arith.mulf %211, %212 : vector<8x8xf32>
    %cst_70 = arith.constant dense<0xFF800000> : vector<8xf32>
    %214 = vector.multi_reduction <maximumf>, %213, %cst_70 [1] : vector<8x8xf32> to vector<8xf32>
    %cst_71 = arith.constant 0xFF800000 : f32
    %215 = vector.broadcast %cst_71 : f32 to vector<8xf32>
    %216 = arith.maximumf %215, %214 : vector<8xf32>
    %217 = vector.shape_cast %216 : vector<8xf32> to vector<8x1xf32>
    %218 = vector.broadcast %217 : vector<8x1xf32> to vector<8x8xf32>
    %219 = arith.subf %213, %218 : vector<8x8xf32>
    %220 = math.exp %219 : vector<8x8xf32>
    %cst_72 = arith.constant dense<0.000000e+00> : vector<8xf32>
    %221 = vector.multi_reduction <add>, %220, %cst_72 [1] : vector<8x8xf32> to vector<8xf32>
    %222 = vector.shape_cast %221 : vector<8xf32> to vector<8x1xf32>
    %223 = vector.broadcast %222 : vector<8x1xf32> to vector<8x8xf32>
    %224 = arith.divf %220, %223 : vector<8x8xf32>
    %cst_73 = arith.constant 0.000000e+00 : f32
    %225 = vector.broadcast %cst_73 : f32 to vector<8x8xf32>
    %226 = arith.subf %225, %224 : vector<8x8xf32>
    %cst_74 = arith.constant dense<0xFF800000> : vector<8xf32>
    %227 = vector.multi_reduction <maximumf>, %226, %cst_74 [1] : vector<8x8xf32> to vector<8xf32>
    %cst_75 = arith.constant 0xFF800000 : f32
    %228 = vector.broadcast %cst_75 : f32 to vector<8xf32>
    %229 = arith.maximumf %228, %227 : vector<8xf32>
    %230 = vector.shape_cast %229 : vector<8xf32> to vector<8x1xf32>
    %231 = vector.broadcast %230 : vector<8x1xf32> to vector<8x8xf32>
    %232 = arith.subf %226, %231 : vector<8x8xf32>
    %233 = math.exp %232 : vector<8x8xf32>
    %cst_76 = arith.constant dense<0.000000e+00> : vector<8xf32>
    %234 = vector.multi_reduction <add>, %233, %cst_76 [1] : vector<8x8xf32> to vector<8xf32>
    %235 = vector.shape_cast %234 : vector<8xf32> to vector<8x1xf32>
    %236 = vector.broadcast %235 : vector<8x1xf32> to vector<8x8xf32>
    %237 = arith.divf %233, %236 : vector<8x8xf32>
    %cst_77 = arith.constant dense<0.000000e+00> : vector<8x8xf32>
    %238 = tpu.matmul %237, %210, %cst_77 {dimension_numbers = #tpu.dot_dimension_numbers<[1], [0], [0], [1], [0, 0, 1, 1], [], []>} : vector<8x8xf32>, vector<8x8xf32>, vector<8x8xf32> -> vector<8x8xf32>
    %239 = arith.addf %208, %238 : vector<8x8xf32>
    %240 = vector.extract_strided_slice %3 {offsets = [8, 24], sizes = [8, 8], strides = [1, 1]} : vector<16x32xf32> to vector<8x8xf32>
    %241 = vector.extract_strided_slice %5 {offsets = [8, 24], sizes = [8, 8], strides = [1, 1]} : vector<16x64xf32> to vector<8x8xf32>
    %242 = vector.extract_strided_slice %5 {offsets = [8, 56], sizes = [8, 8], strides = [1, 1]} : vector<16x64xf32> to vector<8x8xf32>
    %cst_78 = arith.constant dense<0.000000e+00> : vector<8x8xf32>
    %243 = tpu.matmul %240, %241, %cst_78 {dimension_numbers = #tpu.dot_dimension_numbers<[1], [1], [0], [0], [0, 0, 1, 0], [], []>} : vector<8x8xf32>, vector<8x8xf32>, vector<8x8xf32> -> vector<8x8xf32>
    %cst_79 = arith.constant 0.353553385 : f32
    %244 = vector.broadcast %cst_79 : f32 to vector<8x8xf32>
    %245 = arith.mulf %243, %244 : vector<8x8xf32>
    %cst_80 = arith.constant dense<0xFF800000> : vector<8xf32>
    %246 = vector.multi_reduction <maximumf>, %245, %cst_80 [1] : vector<8x8xf32> to vector<8xf32>
    %cst_81 = arith.constant 0xFF800000 : f32
    %247 = vector.broadcast %cst_81 : f32 to vector<8xf32>
    %248 = arith.maximumf %247, %246 : vector<8xf32>
    %249 = vector.shape_cast %248 : vector<8xf32> to vector<8x1xf32>
    %250 = vector.broadcast %249 : vector<8x1xf32> to vector<8x8xf32>
    %251 = arith.subf %245, %250 : vector<8x8xf32>
    %252 = math.exp %251 : vector<8x8xf32>
    %cst_82 = arith.constant dense<0.000000e+00> : vector<8xf32>
    %253 = vector.multi_reduction <add>, %252, %cst_82 [1] : vector<8x8xf32> to vector<8xf32>
    %254 = vector.shape_cast %253 : vector<8xf32> to vector<8x1xf32>
    %255 = vector.broadcast %254 : vector<8x1xf32> to vector<8x8xf32>
    %256 = arith.divf %252, %255 : vector<8x8xf32>
    %cst_83 = arith.constant 0.000000e+00 : f32
    %257 = vector.broadcast %cst_83 : f32 to vector<8x8xf32>
    %258 = arith.subf %257, %256 : vector<8x8xf32>
    %cst_84 = arith.constant dense<0xFF800000> : vector<8xf32>
    %259 = vector.multi_reduction <maximumf>, %258, %cst_84 [1] : vector<8x8xf32> to vector<8xf32>
    %cst_85 = arith.constant 0xFF800000 : f32
    %260 = vector.broadcast %cst_85 : f32 to vector<8xf32>
    %261 = arith.maximumf %260, %259 : vector<8xf32>
    %262 = vector.shape_cast %261 : vector<8xf32> to vector<8x1xf32>
    %263 = vector.broadcast %262 : vector<8x1xf32> to vector<8x8xf32>
    %264 = arith.subf %258, %263 : vector<8x8xf32>
    %265 = math.exp %264 : vector<8x8xf32>
    %cst_86 = arith.constant dense<0.000000e+00> : vector<8xf32>
    %266 = vector.multi_reduction <add>, %265, %cst_86 [1] : vector<8x8xf32> to vector<8xf32>
    %267 = vector.shape_cast %266 : vector<8xf32> to vector<8x1xf32>
    %268 = vector.broadcast %267 : vector<8x1xf32> to vector<8x8xf32>
    %269 = arith.divf %265, %268 : vector<8x8xf32>
    %cst_87 = arith.constant dense<0.000000e+00> : vector<8x8xf32>
    %270 = tpu.matmul %269, %242, %cst_87 {dimension_numbers = #tpu.dot_dimension_numbers<[1], [0], [0], [1], [0, 0, 1, 1], [], []>} : vector<8x8xf32>, vector<8x8xf32>, vector<8x8xf32> -> vector<8x8xf32>
    %271 = arith.addf %240, %270 : vector<8x8xf32>
    %272 = tpu.concatenate %175, %207, %239, %271 in 1 : vector<8x8xf32>, vector<8x8xf32>, vector<8x8xf32>, vector<8x8xf32> -> vector<8x32xf32>
    %273 = vector.extract_strided_slice %272 {offsets = [0, 0], sizes = [1, 32], strides = [1, 1]} : vector<8x32xf32> to vector<1x32xf32>
    %274 = vector.extract_strided_slice %272 {offsets = [1, 0], sizes = [1, 32], strides = [1, 1]} : vector<8x32xf32> to vector<1x32xf32>
    %275 = vector.extract_strided_slice %272 {offsets = [2, 0], sizes = [1, 32], strides = [1, 1]} : vector<8x32xf32> to vector<1x32xf32>
    %276 = vector.extract_strided_slice %272 {offsets = [3, 0], sizes = [1, 32], strides = [1, 1]} : vector<8x32xf32> to vector<1x32xf32>
    %277 = vector.extract_strided_slice %272 {offsets = [4, 0], sizes = [1, 32], strides = [1, 1]} : vector<8x32xf32> to vector<1x32xf32>
    %278 = vector.extract_strided_slice %272 {offsets = [5, 0], sizes = [1, 32], strides = [1, 1]} : vector<8x32xf32> to vector<1x32xf32>
    %279 = vector.extract_strided_slice %272 {offsets = [6, 0], sizes = [1, 32], strides = [1, 1]} : vector<8x32xf32> to vector<1x32xf32>
    %280 = vector.extract_strided_slice %272 {offsets = [7, 0], sizes = [1, 32], strides = [1, 1]} : vector<8x32xf32> to vector<1x32xf32>
    %281 = tpu.concatenate %273, %274, %275, %276, %277, %278, %279, %280 in 1 : vector<1x32xf32>, vector<1x32xf32>, vector<1x32xf32>, vector<1x32xf32>, vector<1x32xf32>, vector<1x32xf32>, vector<1x32xf32>, vector<1x32xf32> -> vector<1x256xf32>
    %282 = tpu.concatenate %143, %281 in 0 : vector<1x256xf32>, vector<1x256xf32> -> vector<2x256xf32>
    %c0_88 = arith.constant 0 : index
    %c0_89 = arith.constant 0 : index
    %283 = vector.load %arg4[%c0_88, %c0_89] : memref<256x192xf32, #tpu.memory_space<vmem>>, vector<256x192xf32>
    %cst_90 = arith.constant dense<0.000000e+00> : vector<2x192xf32>
    %284 = tpu.matmul %282, %283, %cst_90 {dimension_numbers = #tpu.dot_dimension_numbers<[1], [0], [0], [1], [0, 0, 1, 1], [], []>} : vector<2x256xf32>, vector<256x192xf32>, vector<2x192xf32> -> vector<2x192xf32>
    %c0_91 = arith.constant 0 : index
    %c0_92 = arith.constant 0 : index
    %285 = vector.load %arg5[%c0_91, %c0_92] : memref<1x192xf32, #tpu.memory_space<vmem>>, vector<1x192xf32>
    %286 = vector.broadcast %285 : vector<1x192xf32> to vector<2x192xf32>
    %287 = arith.addf %284, %286 : vector<2x192xf32>
    %cst_93 = arith.constant 0.000000e+00 : f32
    %288 = vector.broadcast %cst_93 : f32 to vector<2x192xf32>
    %289 = arith.maximumf %287, %288 : vector<2x192xf32>
    %c0_94 = arith.constant 0 : index
    %c0_95 = arith.constant 0 : index
    %290 = vector.load %arg6[%c0_94, %c0_95] : memref<192x32xf32, #tpu.memory_space<vmem>>, vector<192x32xf32>
    %cst_96 = arith.constant dense<0.000000e+00> : vector<2x32xf32>
    %291 = tpu.matmul %289, %290, %cst_96 {dimension_numbers = #tpu.dot_dimension_numbers<[1], [0], [0], [1], [0, 0, 1, 1], [], []>} : vector<2x192xf32>, vector<192x32xf32>, vector<2x32xf32> -> vector<2x32xf32>
    %c0_97 = arith.constant 0 : index
    %c0_98 = arith.constant 0 : index
    %292 = vector.load %arg7[%c0_97, %c0_98] : memref<1x32xf32, #tpu.memory_space<vmem>>, vector<1x32xf32>
    %293 = vector.broadcast %292 : vector<1x32xf32> to vector<2x32xf32>
    %294 = arith.addf %291, %293 : vector<2x32xf32>
    %cst_99 = arith.constant 0.000000e+00 : f32
    %295 = vector.broadcast %cst_99 : f32 to vector<2x32xf32>
    %296 = arith.maximumf %294, %295 : vector<2x32xf32>
    %c0_100 = arith.constant 0 : index
    %c0_101 = arith.constant 0 : index
    %297 = vector.load %arg8[%c0_100, %c0_101] : memref<32x8xf32, #tpu.memory_space<vmem>>, vector<32x8xf32>
    %cst_102 = arith.constant dense<0.000000e+00> : vector<2x8xf32>
    %298 = tpu.matmul %296, %297, %cst_102 {dimension_numbers = #tpu.dot_dimension_numbers<[1], [0], [0], [1], [0, 0, 1, 1], [], []>} : vector<2x32xf32>, vector<32x8xf32>, vector<2x8xf32> -> vector<2x8xf32>
    %c0_103 = arith.constant 0 : index
    %c0_104 = arith.constant 0 : index
    %299 = vector.load %arg9[%c0_103, %c0_104] : memref<1x8xf32, #tpu.memory_space<vmem>>, vector<1x8xf32>
    %300 = vector.broadcast %299 : vector<1x8xf32> to vector<2x8xf32>
    %301 = arith.addf %298, %300 : vector<2x8xf32>
    %cst_105 = arith.constant 0.000000e+00 : f32
    %302 = vector.broadcast %cst_105 : f32 to vector<2x8xf32>
    %303 = arith.maximumf %301, %302 : vector<2x8xf32>
    %c0_106 = arith.constant 0 : index
    %c0_107 = arith.constant 0 : index
    %304 = vector.load %arg10[%c0_106, %c0_107] : memref<8x2xf32, #tpu.memory_space<vmem>>, vector<8x2xf32>
    %cst_108 = arith.constant dense<0.000000e+00> : vector<2x2xf32>
    %305 = tpu.matmul %303, %304, %cst_108 {dimension_numbers = #tpu.dot_dimension_numbers<[1], [0], [0], [1], [0, 0, 1, 1], [], []>} : vector<2x8xf32>, vector<8x2xf32>, vector<2x2xf32> -> vector<2x2xf32>
    %c0_109 = arith.constant 0 : index
    %c0_110 = arith.constant 0 : index
    %306 = vector.load %arg11[%c0_109, %c0_110] : memref<1x2xf32, #tpu.memory_space<vmem>>, vector<1x2xf32>
    %307 = vector.broadcast %306 : vector<1x2xf32> to vector<2x2xf32>
    %308 = arith.addf %305, %307 : vector<2x2xf32>
    %c0_111 = arith.constant 0 : index
    %c0_112 = arith.constant 0 : index
    %309 = vector.load %arg12[%c0_111, %c0_112] : memref<2x2xf32, #tpu.memory_space<vmem>>, vector<2x2xf32>
    tpu.vector_store %arg12[%c0_111, %c0_112], %308 {strides = array<i32>} : memref<2x2xf32, #tpu.memory_space<vmem>>, vector<2x2xf32>,
    return
  }
}

</mosaic_0001>

<bundles_post_ra>
// kernel: contrastive_attention_network.1
= control target key start
LH: loop header
LB: loop body
LE: loop exit
PB: predicated region body
PF: predicated region fallthrough
CT: control target
= control target key end

     0   :  { %vm137_vm0 = vcmask 195584   ;;  %vm52_vm1 = vcmask 392192   ;;  %s3326_s0 = inlined_call_operand.vmem [shape: f32[16,48], index: 0, kind: input, shape index: {}]   ;;  %s3327_s1 = inlined_call_operand.vmem [shape: f32[16,24], index: 1, kind: input, shape index: {}]   ;;  %s3328_s2 = inlined_call_operand.vmem [shape: f32[48,32], index: 2, kind: input, shape index: {}]   ;;  %s3329_s3 = inlined_call_operand.vmem [shape: f32[24,64], index: 3, kind: input, shape index: {}]   ;;  %s3330_s4 = inlined_call_operand.vmem [shape: f32[256,192], index: 4, kind: input, shape index: {}]   ;;  %s3331_s5 = inlined_call_operand.vmem [shape: f32[1,192], index: 5, kind: input, shape index: {}]   ;;  %s3332_s6 = inlined_call_operand.vmem [shape: f32[192,32], index: 6, kind: input, shape index: {}]   ;;  %s3333_s7 = inlined_call_operand.vmem [shape: f32[1,32], index: 7, kind: input, shape index: {}]   ;;  %s3334_s8 = inlined_call_operand.vmem [shape: f32[32,8], index: 8, kind: input, shape index: {}]   ;;  %s3335_s9 = inlined_call_operand.vmem [shape: f32[1,8], index: 9, kind: input, shape index: {}]   ;;  %s3336_s10 = inlined_call_operand.vmem [shape: f32[8,2], index: 10, kind: input, shape index: {}]   ;;  %s3337_s11 = inlined_call_operand.vmem [shape: f32[1,2], index: 11, kind: input, shape index: {}]   ;;  %s3338_s12 = inlined_call_operand.hbm [shape: f32[2,2], index: 12, kind: output, shape index: {}]  }
   0x1   :  { %v46_v0 = vld [vmem:[%s3328_s2] sm:$0xff]  ;;  %v47_v1 = vld [vmem:[%s3328_s2 + $0x8] sm:$0xff]  ;;  %v48_v5 = vld [vmem:[%s3328_s2 + $0x10] sm:$0xff] }
   0x2   :  { %v134_v2 = vld [vmem:[%s3329_s3] sm:$0xff]  ;;  %v2399_v3 = vpack.c.bf16 %v47_v1, %v46_v0  ;;  %v135_v4 = vld [vmem:[%s3329_s3 + $0x8] sm:$0xff]  ;;  %v49_v6 = vld [vmem:[%s3328_s2 + $0x18] sm:$0xff] }
   0x3   :  { %v2411_v7 = vpack.c.bf16 %v135_v4, %v134_v2  ;;  %v2403_v8 = vpack.c.bf16 %v49_v6, %v48_v5  ;;  %v136_v9 = vld [vmem:[%s3329_s3 + $0x10] sm:$0xff]  ;;  %v44_v10 = vld [vmem:[%s3327_s1] sm:$0xff]  ;;  %v51_v12 = vld [vmem:[%s3328_s2 + $0x28] sm:$0xff] }
   0x4   :  { %2400 = vmatprep.subr.bf16.mxu0 %v2399_v3  ;;  %2300 = vmatprep.mubr.msk.f32.mxu1 %vm137_vm0, %v44_v10  ;;  %v50_v11 = vld [vmem:[%s3328_s2 + $0x20] sm:$0xff] }
   0x5   :  { %v42_v13 = vld [vmem:[%s3326_s0] sm:$0xff]  ;;  %2402 = vmatpush3.bf16.msra.mxu0 %v2399_v3  ;;  %2412 = vmatprep.subr.bf16.mxu1 %v2411_v7 }
   0x6   :  { %17 = vsyncpa [#allocation3], 0  ;;  %2414 = vmatpush3.bf16.msra.mxu1 %v2411_v7  ;;  %2404 = vmatprep.subr.bf16.mxu0 %v2403_v8  ;;  %v2407_v14 = vpack.c.bf16 %v51_v12, %v50_v11  ;;  %v45_v15 = vld [vmem:[%s3327_s1 + $0x8] sm:$0xff]  ;;  %v2655_v17 = vmov 0.0   ;;  %vm2656_vm2 = vmmov 0   ;;  %vm219_vm3 = vcmask 64512  }
   0x7   :  { %2298 = vmatprep.subr.mxu1 %v136_v9  ;;  %2291 = vmatprep.mubr.msk.f32.mxu0 %vm52_vm1, %v42_v13  ;;  %v43_v16 = vld [vmem:[%s3326_s0 + $0x8] sm:$0xff]  ;;  %s2657_s0 = smov 112   ;;  %s2658_s1 = smov 120   ;;  %vm947_vm4 = vcmask 130048   ;;  %vm977_vm5 = vcmask 261120   ;;  %vm979_vm6 = vcmask 523264  }
   0x8   :  { %s2659_s27 = smov 104   ;;  %s2660_s28 = smov 88   ;;  %vm981_vm7 = vcmask 785408   ;;  %vm1754_vm8 = vcmask 1040384   ;;  %vm2177_vm9 = vcmask 9216  }
   0x9   :  { %2406 = vmatpush3.bf16.msra.mxu0 %v2403_v8  ;;  %s2661_s29 = smov 96   ;;  %s2662_s30 = smov 72  }
   0xa   :  { %2299 = vmatpush3.msra.mxu1 %v136_v9  ;;  %2408 = vmatprep.subr.bf16.mxu0 %v2407_v14  ;;  %s2663_s13 = smov 80   ;;  %s2664_s14 = smov 8  }
   0xb   :  { %2301 = vmatmul.mubr.msk.f32.vlgmr.msra.gmra.mrb[0].mxu1 %vm137_vm0, %v45_v15  ;;  %2303 = vmatprep.subr.mxu1 %v2655_v17  ;;  %s2665_s15 = smov 16   ;;  %s2666_s16 = smov 24  }
   0xc   :  { %2305 = vmatprep.mubr.msk.f32.mxu1 %vm2656_vm2, %v2655_v17  ;;  %s2668_s20 = smov 32  }
   0xd   :  { %2410 = vmatpush3.bf16.msra.mxu0 %v2407_v14 }
   0xe   :  { %2313 = vmatprep.subr.mxu0 %v2655_v17 }
  0x10   :  { %2292 = vmatmul.mubr.msk.f32.vlgmr.msra.gmra.mrb[0].mxu0 %vm52_vm1, %v43_v16 }
  0x11   :  { %2315 = vmatprep.mubr.msk.f32.mxu0 %vm2656_vm2, %v2655_v17 }
  0xde   :  { %v2785_v18 = vpop.f32.mrb[0].mxu1 }
  0xdf   :  { %v2787_v19 = vpop.f32.mrb[1].mxu1 }
  0xe0   :  { %582 = vrot.lane.b32.xlu1 %v2787_v19, %s2657_s0  ;;  %399 = vrot.lane.b32.xlu0 %v2787_v19, %s2658_s1 }
  0xe1   :  { %2304 = vmatpush3.xpose.msk.msra.mxu1 %vm219_vm3, %v2787_v19 }
  0xe2   :  { %2308 = vmatprep.subr.mxu1 %v2655_v17 }
  0xe3   :  { %v2794_v20 = vpop.f32.mrb[0].mxu0 }
  0xe4   :  { %v2796_v21 = vpop.f32.mrb[1].mxu0 }
  0xe5   :  { %580 = vrot.lane.b32.xlu1 %v2796_v21, %s2657_s0  ;;  %397 = vrot.lane.b32.xlu0 %v2796_v21, %s2658_s1 }
  0xe6   :  { %2306 = vmatmul.mubr.msk.f32.vlgmr.msra.gmra.mrb[2].mxu1 %vm219_vm3, %v2796_v21 }
  0xe7   :  { %2310 = vmatprep.mubr.msk.f32.mxu1 %vm2656_vm2, %v2655_v17 }
  0xe9   :  { %763 = vrot.lane.b32.xlu1 %v2796_v21, %s2659_s27  ;;  %765 = vrot.lane.b32.xlu0 %v2787_v19, %s2659_s27 }
  0xed   :  { %1163 = vrot.lane.b32.xlu1 %v2794_v20, %s2658_s1  ;;  %1165 = vrot.lane.b32.xlu0 %v2785_v18, %s2658_s1 }
  0xf1   :  { %1346 = vrot.lane.b32.xlu1 %v2794_v20, %s2657_s0  ;;  %1348 = vrot.lane.b32.xlu0 %v2785_v18, %s2657_s0 }
  0xf5   :  { %1529 = vrot.lane.b32.xlu1 %v2794_v20, %s2659_s27  ;;  %1531 = vrot.lane.b32.xlu0 %v2785_v18, %s2659_s27 }
 0x152   :  { %v583_v22 = vpop.permute.xlu1 %582  ;;  %v400_v23 = vpop.permute.xlu0 %399 }
 0x153   :  { %2314 = vmatpush3.xpose.msk.msra.mxu0 %vm219_vm3, %v400_v23 }
 0x154   :  { %2323 = vmatprep.subr.mxu0 %v2655_v17 }
 0x157   :  { %v581_v24 = vpop.permute.xlu1 %580  ;;  %v398_v25 = vpop.permute.xlu0 %397 }
 0x158   :  { %2316 = vmatmul.mubr.msk.f32.vlgmr.msra.gmra.mrb[2].mxu0 %vm219_vm3, %v398_v25 }
 0x159   :  { %2324 = vmatpush3.xpose.msk.msra.mxu0 %vm219_vm3, %v583_v22  ;;  %2325 = vmatprep.mubr.msk.f32.mxu0 %vm2656_vm2, %v2655_v17 }
 0x15a   :  { %2333 = vmatprep.subr.mxu0 %v2655_v17 }
 0x15b   :  { %v766_v26 = vpop.permute.xlu0 %765  ;;  %v764_v27 = vpop.permute.xlu1 %763 }
 0x15c   :  { %2326 = vmatmul.mubr.msk.f32.vlgmr.msra.gmra.mrb[4].mxu0 %vm219_vm3, %v581_v24 }
 0x15d   :  { %2334 = vmatpush3.xpose.msk.msra.mxu0 %vm219_vm3, %v766_v26  ;;  %2335 = vmatprep.mubr.msk.f32.mxu0 %vm2656_vm2, %v2655_v17 }
 0x15e   :  { %2343 = vmatprep.subr.mxu0 %v2655_v17 }
 0x15f   :  { %v1166_v28 = vpop.permute.xlu0 %1165  ;;  %v1164_v29 = vpop.permute.xlu1 %1163 }
 0x160   :  { %2336 = vmatmul.mubr.msk.f32.vlgmr.msra.gmra.mrb[6].mxu0 %vm219_vm3, %v764_v27 }
 0x161   :  { %2344 = vmatpush3.xpose.msk.msra.mxu0 %vm219_vm3, %v2785_v18  ;;  %2345 = vmatprep.mubr.msk.f32.mxu0 %vm2656_vm2, %v2655_v17 }
 0x162   :  { %2353 = vmatprep.subr.mxu0 %v2655_v17 }
 0x163   :  { %v1349_v30 = vpop.permute.xlu0 %1348  ;;  %v1347_v31 = vpop.permute.xlu1 %1346 }
 0x164   :  { %2346 = vmatmul.mubr.msk.f32.vlgmr.msra.gmra.mrb[8].mxu0 %vm219_vm3, %v2794_v20 }
 0x165   :  { %2354 = vmatpush3.xpose.msk.msra.mxu0 %vm219_vm3, %v1166_v28  ;;  %2355 = vmatprep.mubr.msk.f32.mxu0 %vm2656_vm2, %v2655_v17 }
 0x166   :  { %2363 = vmatprep.subr.mxu0 %v2655_v17 }
 0x167   :  { %v1532_v32 = vpop.permute.xlu0 %1531  ;;  %v1530_v33 = vpop.permute.xlu1 %1529 }
 0x168   :  { %2356 = vmatmul.mubr.msk.f32.vlgmr.msra.gmra.mrb[10].mxu0 %vm219_vm3, %v1164_v29 }
 0x169   :  { %2364 = vmatpush3.xpose.msk.msra.mxu0 %vm219_vm3, %v1349_v30  ;;  %2365 = vmatprep.mubr.msk.f32.mxu0 %vm2656_vm2, %v2655_v17 }
 0x16a   :  { %2373 = vmatprep.subr.mxu0 %v2655_v17 }
 0x16c   :  { %2366 = vmatmul.mubr.msk.f32.vlgmr.msra.gmra.mrb[12].mxu0 %vm219_vm3, %v1347_v31 }
 0x16d   :  { %2374 = vmatpush3.xpose.msk.msra.mxu0 %vm219_vm3, %v1532_v32  ;;  %2375 = vmatprep.mubr.msk.f32.mxu0 %vm2656_vm2, %v2655_v17 }
 0x170   :  { %2376 = vmatmul.mubr.msk.f32.vlgmr.msra.gmra.mrb[14].mxu0 %vm219_vm3, %v1530_v33 }
 0x1b9   :  { %v292_v34 = vpop.f32.mrb[2].mxu1 }
 0x1ba   :  { %v296_v35 = vmul.f32 0.35355338, %v292_v34  ;;  %v2307_v36 = vpop.f32.mrb[3].mxu1 }
 0x1bc   :  { %v297_v37 = vsel %vm219_vm3, %v296_v35, -inf }
 0x1bd   :  { %298 = vmax.xlane.f32.xlu0 %v297_v37 }
 0x22b   :  { %v471_v38 = vpop.f32.mrb[2].mxu0 }
 0x22c   :  { %v475_v39 = vmul.f32 0.35355338, %v471_v38  ;;  %v2317_v40 = vpop.f32.mrb[3].mxu0 }
 0x22e   :  { %v476_v41 = vsel %vm219_vm3, %v475_v39, -inf }
 0x22f   :  { %477 = vmax.xlane.f32.xlu1 %v476_v41  ;;  %v654_v42 = vpop.f32.mrb[4].mxu0 }
 0x230   :  { %v658_v43 = vmul.f32 0.35355338, %v654_v42  ;;  %v2327_v44 = vpop.f32.mrb[5].mxu0 }
 0x232   :  { %v659_v45 = vsel %vm219_vm3, %v658_v43, -inf }
 0x233   :  { %v837_v46 = vpop.f32.mrb[6].mxu0  ;;  %660 = vmax.xlane.f32.xlu0 %v659_v45 }
 0x234   :  { %v841_v47 = vmul.f32 0.35355338, %v837_v46  ;;  %v2337_v48 = vpop.f32.mrb[7].mxu0 }
 0x236   :  { %v842_v49 = vsel %vm219_vm3, %v841_v47, -inf }
 0x237   :  { %v1058_v50 = vpop.f32.mrb[8].mxu0  ;;  %843 = vmax.xlane.f32.xlu0 %v842_v49 }
 0x238   :  { %v1062_v51 = vmul.f32 0.35355338, %v1058_v50  ;;  %v2347_v52 = vpop.f32.mrb[9].mxu0 }
 0x23a   :  { %v1063_v53 = vsel %vm219_vm3, %v1062_v51, -inf }
 0x23b   :  { %1064 = vmax.xlane.f32.xlu1 %v1063_v53  ;;  %v1237_v54 = vpop.f32.mrb[10].mxu0 }
 0x23c   :  { %v1241_v55 = vmul.f32 0.35355338, %v1237_v54  ;;  %v2357_v56 = vpop.f32.mrb[11].mxu0 }
 0x23e   :  { %v1242_v57 = vsel %vm219_vm3, %v1241_v55, -inf }
 0x23f   :  { %v1420_v58 = vpop.f32.mrb[12].mxu0  ;;  %1243 = vmax.xlane.f32.xlu0 %v1242_v57 }
 0x240   :  { %v1424_v59 = vmul.f32 0.35355338, %v1420_v58  ;;  %v2367_v60 = vpop.f32.mrb[13].mxu0 }
 0x242   :  { %v1425_v61 = vsel %vm219_vm3, %v1424_v59, -inf }
 0x243   :  { %1426 = vmax.xlane.f32.xlu1 %v1425_v61  ;;  %v1603_v62 = vpop.f32.mrb[14].mxu0 }
 0x244   :  { %v1607_v63 = vmul.f32 0.35355338, %v1603_v62  ;;  %v2377_v0 = vpop.f32.mrb[15].mxu0 }
 0x246   :  { %v1608_v1 = vsel %vm219_vm3, %v1607_v63, -inf }
 0x247   :  { %1609 = vmax.xlane.f32.xlu0 %v1608_v1 }
 0x24a   :  { %v299_v2 = vpop.xlane.xlu0 %298 }
 0x24b   :  { %v300_v3 = vsub.f32 %v296_v35, %v299_v2 }
 0x24d   :  { %v301_v4 = vmul.f32 1.442695, %v300_v3 }
 0x24f   :  { %2567 = vpow2.f32 %v301_v4 }
 0x259   :  { %v2568_v5 = vpop.eup %2567 }
 0x25a   :  { %v303_v6 = vsel %vm219_vm3, %v2568_v5, 0.0 }
 0x25b   :  { %304 = vadd.xlane.f32.xlu1 %v303_v6 }
 0x2bc   :  { %v478_v7 = vpop.xlane.xlu1 %477 }
 0x2bd   :  { %v479_v8 = vsub.f32 %v475_v39, %v478_v7 }
 0x2bf   :  { %v480_v9 = vmul.f32 1.442695, %v479_v8 }
 0x2c0   :  { %v661_v10 = vpop.xlane.xlu0 %660 }
 0x2c1   :  { %2569 = vpow2.f32 %v480_v9  ;;  %v662_v11 = vsub.f32 %v658_v43, %v661_v10 }
 0x2c3   :  { %v663_v12 = vmul.f32 1.442695, %v662_v11 }
 0x2c4   :  { %v844_v13 = vpop.xlane.xlu0 %843 }
 0x2c5   :  { %2571 = vpow2.f32 %v663_v12  ;;  %v845_v14 = vsub.f32 %v841_v47, %v844_v13 }
 0x2c7   :  { %v846_v15 = vmul.f32 1.442695, %v845_v14 }
 0x2c8   :  { %v1065_v16 = vpop.xlane.xlu1 %1064 }
 0x2c9   :  { %2573 = vpow2.f32 %v846_v15  ;;  %v1066_v22 = vsub.f32 %v1062_v51, %v1065_v16 }
 0x2cb   :  { %v2570_v23 = vpop.eup %2569  ;;  %v1067_v24 = vmul.f32 1.442695, %v1066_v22 }
 0x2cc   :  { %v1244_v25 = vpop.xlane.xlu0 %1243  ;;  %v482_v26 = vsel %vm219_vm3, %v2570_v23, 0.0 }
 0x2cd   :  { %2575 = vpow2.f32 %v1067_v24  ;;  %v1245_v27 = vsub.f32 %v1241_v55, %v1244_v25  ;;  %483 = vadd.xlane.f32.xlu0 %v482_v26 }
 0x2cf   :  { %v2572_v28 = vpop.eup %2571  ;;  %v1246_v29 = vmul.f32 1.442695, %v1245_v27 }
 0x2d0   :  { %v1427_v30 = vpop.xlane.xlu1 %1426  ;;  %v665_v31 = vsel %vm219_vm3, %v2572_v28, 0.0 }
 0x2d1   :  { %2577 = vpow2.f32 %v1246_v29  ;;  %v1428_v32 = vsub.f32 %v1424_v59, %v1427_v30  ;;  %666 = vadd.xlane.f32.xlu1 %v665_v31 }
 0x2d3   :  { %v2574_v33 = vpop.eup %2573  ;;  %v1429_v34 = vmul.f32 1.442695, %v1428_v32 }
 0x2d4   :  { %v1610_v35 = vpop.xlane.xlu0 %1609  ;;  %v848_v36 = vsel %vm219_vm3, %v2574_v33, 0.0 }
 0x2d5   :  { %2579 = vpow2.f32 %v1429_v34  ;;  %v1611_v37 = vsub.f32 %v1607_v63, %v1610_v35  ;;  %849 = vadd.xlane.f32.xlu0 %v848_v36 }
 0x2d7   :  { %v2576_v38 = vpop.eup %2575  ;;  %v1612_v39 = vmul.f32 1.442695, %v1611_v37 }
 0x2d8   :  { %v1069_v40 = vsel %vm219_vm3, %v2576_v38, 0.0 }
 0x2d9   :  { %2581 = vpow2.f32 %v1612_v39  ;;  %1070 = vadd.xlane.f32.xlu1 %v1069_v40 }
 0x2db   :  { %v2578_v41 = vpop.eup %2577 }
 0x2dc   :  { %v1248_v42 = vsel %vm219_vm3, %v2578_v41, 0.0 }
 0x2dd   :  { %1249 = vadd.xlane.f32.xlu0 %v1248_v42 }
 0x2df   :  { %v2580_v43 = vpop.eup %2579 }
 0x2e0   :  { %v1431_v44 = vsel %vm219_vm3, %v2580_v43, 0.0 }
 0x2e1   :  { %1432 = vadd.xlane.f32.xlu1 %v1431_v44 }
 0x2e3   :  { %v2582_v45 = vpop.eup %2581 }
 0x2e4   :  { %v1614_v46 = vsel %vm219_vm3, %v2582_v45, 0.0 }
 0x2e5   :  { %1615 = vadd.xlane.f32.xlu0 %v1614_v46 }
 0x2e8   :  { %v305_v47 = vpop.xlane.xlu1 %304 }
 0x2e9   :  { %2583 = vrcp.f32 %v305_v47 }
 0x2f2   :  { %499 = vrot.lane.b32.xlu1 %v2787_v19, %s2660_s28 }
 0x2f3   :  { %v2584_v48 = vpop.eup %2583 }
 0x2f4   :  { %v2866_v49 = vmul.f32 %v2584_v48, %v2568_v5 }
 0x2f6   :  { %v308_v50 = vsub.f32 0.0, %v2866_v49 }
 0x2f8   :  { %v309_v51 = vsel %vm219_vm3, %v308_v50, -inf }
 0x2fb   :  { %320 = vrot.lane.b32.xlu0 %v2787_v19, %s2661_s29 }
 0x316   :  { %310 = vmax.xlane.f32.xlu1 %v309_v51 }
 0x35a   :  { %v484_v52 = vpop.xlane.xlu0 %483 }
 0x35b   :  { %2585 = vrcp.f32 %v484_v52 }
 0x35e   :  { %v667_v53 = vpop.xlane.xlu1 %666 }
 0x35f   :  { %2587 = vrcp.f32 %v667_v53 }
 0x362   :  { %v850_v54 = vpop.xlane.xlu0 %849 }
 0x363   :  { %2589 = vrcp.f32 %v850_v54 }
 0x365   :  { %v2586_v55 = vpop.eup %2585 }
 0x366   :  { %v1071_v56 = vpop.xlane.xlu1 %1070  ;;  %v486_v57 = vmul.f32 %v2586_v55, %v2570_v23 }
 0x367   :  { %2591 = vrcp.f32 %v1071_v56 }
 0x368   :  { %v487_v58 = vsub.f32 0.0, %v486_v57 }
 0x369   :  { %v2588_v59 = vpop.eup %2587 }
 0x36a   :  { %v1250_v60 = vpop.xlane.xlu0 %1249  ;;  %v488_v61 = vsel %vm219_vm3, %v487_v58, -inf  ;;  %v669_v62 = vmul.f32 %v2588_v59, %v2572_v28 }
 0x36b   :  { %2593 = vrcp.f32 %v1250_v60  ;;  %489 = vmax.xlane.f32.xlu0 %v488_v61 }
 0x36c   :  { %v670_v63 = vsub.f32 0.0, %v669_v62 }
 0x36d   :  { %v2590_v0 = vpop.eup %2589 }
 0x36e   :  { %v1433_v1 = vpop.xlane.xlu1 %1432  ;;  %v671_v2 = vsel %vm219_vm3, %v670_v63, -inf  ;;  %v852_v3 = vmul.f32 %v2590_v0, %v2574_v33 }
 0x36f   :  { %2595 = vrcp.f32 %v1433_v1  ;;  %672 = vmax.xlane.f32.xlu1 %v671_v2 }
 0x370   :  { %v853_v4 = vsub.f32 0.0, %v852_v3 }
 0x371   :  { %v2592_v5 = vpop.eup %2591 }
 0x372   :  { %v1616_v6 = vpop.xlane.xlu0 %1615  ;;  %v854_v7 = vsel %vm219_vm3, %v853_v4, -inf  ;;  %v1073_v8 = vmul.f32 %v2592_v5, %v2576_v38  ;;  %v2882_v29 = vpop.permute.xlu1 %499 }
 0x373   :  { %2597 = vrcp.f32 %v1616_v6  ;;  %855 = vmax.xlane.f32.xlu0 %v854_v7 }
 0x374   :  { %v1074_v9 = vsub.f32 0.0, %v1073_v8 }
 0x375   :  { %v2594_v10 = vpop.eup %2593 }
 0x376   :  { %v321_v11 = vpop.permute.xlu0 %320  ;;  %v1075_v12 = vsel %vm219_vm3, %v1074_v9, -inf  ;;  %v1252_v13 = vmul.f32 %v2594_v10, %v2578_v41 }
 0x377   :  { %1076 = vmax.xlane.f32.xlu1 %v1075_v12  ;;  %2309 = vmatpush3.msra.mxu1 %v321_v11 }
 0x378   :  { %v1253_v14 = vsub.f32 0.0, %v1252_v13  ;;  %2318 = vmatprep.subr.mxu1 %v2655_v17 }
 0x379   :  { %v2596_v15 = vpop.eup %2595 }
 0x37a   :  { %v1254_v16 = vsel %vm219_vm3, %v1253_v14, -inf  ;;  %v1435_v22 = vmul.f32 %v2596_v15, %v2580_v43 }
 0x37b   :  { %1255 = vmax.xlane.f32.xlu0 %v1254_v16 }
 0x37c   :  { %v1436_v23 = vsub.f32 0.0, %v1435_v22 }
 0x37d   :  { %v2598_v24 = vpop.eup %2597 }
 0x37e   :  { %v1437_v25 = vsel %vm219_vm3, %v1436_v23, -inf  ;;  %v1618_v26 = vmul.f32 %v2598_v24, %v2582_v45 }
 0x37f   :  { %1438 = vmax.xlane.f32.xlu1 %v1437_v25 }
 0x380   :  { %v1619_v27 = vsub.f32 0.0, %v1618_v26 }
 0x382   :  { %v1620_v28 = vsel %vm219_vm3, %v1619_v27, -inf }
 0x383   :  { %1621 = vmax.xlane.f32.xlu0 %v1620_v28 }
 0x390   :  { %865 = vrot.lane.b32.xlu1 %v2787_v19, %s2662_s30 }
 0x399   :  { %682 = vrot.lane.b32.xlu0 %v2787_v19, %s2663_s13 }
 0x3a3   :  { %v311_v30 = vpop.xlane.xlu1 %310 }
 0x3a4   :  { %v312_v31 = vsub.f32 %v308_v50, %v311_v30 }
 0x3a6   :  { %v313_v32 = vmul.f32 1.442695, %v312_v31 }
 0x3a8   :  { %2599 = vpow2.f32 %v313_v32 }
 0x3b2   :  { %v2600_v33 = vpop.eup %2599 }
 0x3b3   :  { %v315_v34 = vsel %vm219_vm3, %v2600_v33, 0.0 }
 0x3b4   :  { %316 = vadd.xlane.f32.xlu1 %v315_v34 }
 0x3f8   :  { %v490_v35 = vpop.xlane.xlu0 %489 }
 0x3f9   :  { %v491_v36 = vsub.f32 %v487_v58, %v490_v35 }
 0x3fb   :  { %v492_v37 = vmul.f32 1.442695, %v491_v36 }
 0x3fc   :  { %v673_v38 = vpop.xlane.xlu1 %672 }
 0x3fd   :  { %2601 = vpow2.f32 %v492_v37  ;;  %v674_v39 = vsub.f32 %v670_v63, %v673_v38 }
 0x3ff   :  { %v675_v40 = vmul.f32 1.442695, %v674_v39 }
 0x400   :  { %v856_v41 = vpop.xlane.xlu0 %855 }
 0x401   :  { %2603 = vpow2.f32 %v675_v40  ;;  %v857_v19 = vsub.f32 %v853_v4, %v856_v41 }
 0x403   :  { %v858_v42 = vmul.f32 1.442695, %v857_v19 }
 0x404   :  { %v1077_v49 = vpop.xlane.xlu1 %1076 }
 0x405   :  { %2605 = vpow2.f32 %v858_v42  ;;  %v1078_v50 = vsub.f32 %v1074_v9, %v1077_v49 }
 0x407   :  { %v2602_v43 = vpop.eup %2601  ;;  %v1079_v54 = vmul.f32 1.442695, %v1078_v50 }
 0x408   :  { %v494_v44 = vsel %vm219_vm3, %v2602_v43, 0.0  ;;  %v1256_v51 = vpop.xlane.xlu0 %1255 }
 0x409   :  { %495 = vadd.xlane.f32.xlu0 %v494_v44  ;;  %v1257_v53 = vsub.f32 %v1253_v14, %v1256_v51  ;;  %2607 = vpow2.f32 %v1079_v54 }
 0x40b   :  { %v2604_v45 = vpop.eup %2603  ;;  %v1258_v57 = vmul.f32 1.442695, %v1257_v53 }
 0x40c   :  { %v677_v46 = vsel %vm219_vm3, %v2604_v45, 0.0  ;;  %v1439_v52 = vpop.xlane.xlu1 %1438 }
 0x40d   :  { %678 = vadd.xlane.f32.xlu1 %v677_v46  ;;  %v1440_v55 = vsub.f32 %v1436_v23, %v1439_v52  ;;  %2609 = vpow2.f32 %v1258_v57  ;;  %v1760_v57 = vld [vmem:[%s3330_s4 + $0x18] sm:$0xff] }
 0x40f   :  { %v2887_v47 = vpop.eup %2605  ;;  %v1441_v58 = vmul.f32 1.442695, %v1440_v55 }
 0x410   :  { %v860_v48 = vsel %vm219_vm3, %v2887_v47, 0.0  ;;  %v1622_v56 = vpop.xlane.xlu0 %1621  ;;  %v866_v61 = vpop.permute.xlu1 %865 }
 0x411   :  { %861 = vadd.xlane.f32.xlu0 %v860_v48  ;;  %v1623_v59 = vsub.f32 %v1619_v27, %v1622_v56  ;;  %2611 = vpow2.f32 %v1441_v58  ;;  %v1758_v56 = vld [vmem:[%s3330_s4 + $0x8] sm:$0xff]  ;;  %v1757_v58 = vld [vmem:[%s3330_s4] sm:$0xff] }
 0x413   :  { %v1624_v60 = vmul.f32 1.442695, %v1623_v59  ;;  %v2608_v62 = vpop.eup %2607  ;;  %v2415_v59 = vpack.c.bf16 %v1760_v57, %v1758_v56  ;;  %v1798_v56 = vld [vmem:[%s3330_s4 + $0x148] sm:$0xff]  ;;  %v1800_v57 = vld [vmem:[%s3330_s4 + $0x158] sm:$0xff] }
 0x414   :  { %v1081_v1 = vsel %vm219_vm3, %v2608_v62, 0.0  ;;  %v683_v9 = vpop.permute.xlu0 %682 }
 0x415   :  { %2613 = vpow2.f32 %v1624_v60  ;;  %v1759_v60 = vld [vmem:[%s3330_s4 + $0x10] sm:$0xff]  ;;  %2416 = vmatprep.subr.bf16.mxu0 %v2415_v59  ;;  %v2455_v59 = vpack.c.bf16 %v1800_v57, %v1798_v56 }
 0x417   :  { %v2895_v63 = vpop.eup %2609 }
 0x418   :  { %v1260_v4 = vsel %vm219_vm3, %v2895_v63, 0.0 }
 0x41b   :  { %v2898_v2 = vpop.eup %2611 }
 0x41c   :  { %v1443_v3 = vsel %vm219_vm3, %v2898_v2, 0.0 }
 0x41e   :  { %1265 = vrot.lane.b32.xlu1 %v2785_v18, %s2660_s28 }
 0x41f   :  { %v2904_v5 = vpop.eup %2613 }
 0x420   :  { %v1626_v6 = vsel %vm219_vm3, %v2904_v5, 0.0 }
 0x427   :  { %1086 = vrot.lane.b32.xlu0 %v2785_v18, %s2661_s29 }
 0x441   :  { %v317_v0 = vpop.xlane.xlu1 %316 }
 0x442   :  { %2615 = vrcp.f32 %v317_v0  ;;  %1082 = vadd.xlane.f32.xlu1 %v1081_v1  ;;  %v1761_v1 = vld [vmem:[%s3330_s4 + $0x20] sm:$0xff] }
 0x446   :  { %1444 = vadd.xlane.f32.xlu1 %v1443_v3  ;;  %1261 = vadd.xlane.f32.xlu0 %v1260_v4  ;;  %v1766_v3 = vld [vmem:[%s3330_s4 + $0x48] sm:$0xff]  ;;  %v1768_v4 = vld [vmem:[%s3330_s4 + $0x58] sm:$0xff] }
 0x44a   :  { %1627 = vadd.xlane.f32.xlu1 %v1626_v6  ;;  %v2423_v6 = vpack.c.bf16 %v1768_v4, %v1766_v3 }
 0x44c   :  { %v2616_v7 = vpop.eup %2615 }
 0x44d   :  { %v319_v8 = vmul.f32 %v2616_v7, %v2600_v33  ;;  %v1765_v7 = vld [vmem:[%s3330_s4 + $0x40] sm:$0xff] }
 0x44f   :  { %2311 = vmatmul.mubr.msk.f32.vlgmr.msra.gmra.mrb[4].mxu1 %vm219_vm3, %v319_v8  ;;  %v1767_v8 = vld [vmem:[%s3330_s4 + $0x50] sm:$0xff] }
 0x450   :  { %2319 = vmatpush3.msra.mxu1 %v2882_v29  ;;  %2320 = vmatprep.mubr.msk.f32.mxu1 %vm2656_vm2, %v2655_v17 }
 0x451   :  { %2328 = vmatprep.subr.mxu1 %v2655_v17 }
 0x45b   :  { %1631 = vrot.lane.b32.xlu1 %v2785_v18, %s2662_s30 }
 0x45c   :  { %1448 = vrot.lane.b32.xlu0 %v2785_v18, %s2663_s13 }
 0x496   :  { %v496_v10 = vpop.xlane.xlu0 %495 }
 0x497   :  { %2617 = vrcp.f32 %v496_v10  ;;  %v1772_v10 = vld [vmem:[%s3330_s4 + $0x78] sm:$0xff] }
 0x49a   :  { %v679_v11 = vpop.xlane.xlu1 %678 }
 0x49b   :  { %2619 = vrcp.f32 %v679_v11  ;;  %v2425_v11 = vpack.c.bf16 %v1767_v8, %v1765_v7 }
 0x49e   :  { %v862_v12 = vpop.xlane.xlu0 %861  ;;  %v1266_v24 = vpop.permute.xlu1 %1265 }
 0x49f   :  { %2621 = vrcp.f32 %v862_v12 }
 0x4a1   :  { %v2618_v13 = vpop.eup %2617 }
 0x4a2   :  { %v498_v14 = vmul.f32 %v2618_v13, %v2602_v43  ;;  %v1087_v23 = vpop.permute.xlu0 %1086  ;;  %v1769_v13 = vld [vmem:[%s3330_s4 + $0x60] sm:$0xff] }
 0x4a4   :  { %2321 = vmatmul.mubr.msk.f32.vlgmr.msra.gmra.mrb[6].mxu1 %vm219_vm3, %v498_v14  ;;  %v1771_v14 = vld [vmem:[%s3330_s4 + $0x70] sm:$0xff] }
 0x4a5   :  { %v2620_v15 = vpop.eup %2619  ;;  %2329 = vmatpush3.msra.mxu1 %v683_v9  ;;  %2330 = vmatprep.mubr.msk.f32.mxu1 %vm2656_vm2, %v2655_v17  ;;  %v1770_v9 = vld [vmem:[%s3330_s4 + $0x68] sm:$0xff] }
 0x4a6   :  { %v681_v16 = vmul.f32 %v2620_v15, %v2604_v45  ;;  %2338 = vmatprep.subr.mxu1 %v2655_v17  ;;  %v2427_v12 = vpack.c.bf16 %v1772_v10, %v1770_v9  ;;  %v1774_v15 = vld [vmem:[%s3330_s4 + $0x88] sm:$0xff] }
 0x4a7   :  { %v1806_v10 = vld [vmem:[%s3330_s4 + $0x188] sm:$0xff] }
 0x4a8   :  { %2331 = vmatmul.mubr.msk.f32.vlgmr.msra.gmra.mrb[8].mxu1 %vm219_vm3, %v681_v16  ;;  %v1776_v16 = vld [vmem:[%s3330_s4 + $0x98] sm:$0xff] }
 0x4a9   :  { %v2622_v18 = vpop.eup %2621  ;;  %2339 = vmatpush3.msra.mxu1 %v866_v61  ;;  %2340 = vmatprep.mubr.msk.f32.mxu1 %vm2656_vm2, %v2655_v17  ;;  %v1762_v61 = vld [vmem:[%s3330_s4 + $0x28] sm:$0xff] }
 0x4aa   :  { %v864_v22 = vmul.f32 %v2622_v18, %v2887_v47  ;;  %2348 = vmatprep.subr.mxu1 %v2655_v17  ;;  %v2429_v18 = vpack.c.bf16 %v1771_v14, %v1769_v13 }
 0x4ac   :  { %2341 = vmatmul.mubr.msk.f32.vlgmr.msra.gmra.mrb[10].mxu1 %vm219_vm3, %v864_v22  ;;  %v2431_v22 = vpack.c.bf16 %v1776_v16, %v1774_v15 }
 0x4ad   :  { %2349 = vmatpush3.msra.mxu1 %v1087_v23  ;;  %2350 = vmatprep.mubr.msk.f32.mxu1 %vm2656_vm2, %v2655_v17  ;;  %v1773_v23 = vld [vmem:[%s3330_s4 + $0x80] sm:$0xff] }
 0x4ae   :  { %2358 = vmatprep.subr.mxu1 %v2655_v17 }
 0x4cf   :  { %v1083_v25 = vpop.xlane.xlu1 %1082 }
 0x4d0   :  { %2623 = vrcp.f32 %v1083_v25  ;;  %v1778_v25 = vld [vmem:[%s3330_s4 + $0xa8] sm:$0xff] }
 0x4d3   :  { %v1445_v26 = vpop.xlane.xlu1 %1444  ;;  %v1262_v27 = vpop.xlane.xlu0 %1261 }
 0x4d4   :  { %2625 = vrcp.f32 %v1262_v27 }
 0x4d5   :  { %2627 = vrcp.f32 %v1445_v26  ;;  %v1780_v26 = vld [vmem:[%s3330_s4 + $0xb8] sm:$0xff] }
 0x4d7   :  { %v1628_v28 = vpop.xlane.xlu1 %1627  ;;  %v1449_v34 = vpop.permute.xlu0 %1448 }
 0x4d8   :  { %2629 = vrcp.f32 %v1628_v28  ;;  %v2435_v28 = vpack.c.bf16 %v1780_v26, %v1778_v25  ;;  %v1810_v25 = vld [vmem:[%s3330_s4 + $0x1a8] sm:$0xff]  ;;  %v1812_v26 = vld [vmem:[%s3330_s4 + $0x1b8] sm:$0xff] }
 0x4da   :  { %v2624_v29 = vpop.eup %2623 }
 0x4db   :  { %v1085_v30 = vmul.f32 %v2624_v29, %v2608_v62  ;;  %v1632_v37 = vpop.permute.xlu1 %1631  ;;  %v1764_v62 = vld [vmem:[%s3330_s4 + $0x38] sm:$0xff]  ;;  %v1777_v29 = vld [vmem:[%s3330_s4 + $0xa0] sm:$0xff] }
 0x4dc   :  { %v2419_v0 = vpack.c.bf16 %v1764_v62, %v1762_v61  ;;  %v1799_v61 = vld [vmem:[%s3330_s4 + $0x150] sm:$0xff] }
 0x4dd   :  { %2351 = vmatmul.mubr.msk.f32.vlgmr.msra.gmra.mrb[12].mxu1 %vm219_vm3, %v1085_v30  ;;  %v1779_v30 = vld [vmem:[%s3330_s4 + $0xb0] sm:$0xff] }
 0x4de   :  { %2359 = vmatpush3.msra.mxu1 %v1266_v24  ;;  %2360 = vmatprep.mubr.msk.f32.mxu1 %vm2656_vm2, %v2655_v17  ;;  %v2626_v31 = vpop.eup %2625  ;;  %v1775_v24 = vld [vmem:[%s3330_s4 + $0x90] sm:$0xff] }
 0x4df   :  { %2368 = vmatprep.subr.mxu1 %v2655_v17  ;;  %v1264_v32 = vmul.f32 %v2626_v31, %v2895_v63  ;;  %v2628_v33 = vpop.eup %2627  ;;  %v2417_v63 = vpack.c.bf16 %v1759_v60, %v1757_v58  ;;  %v2433_v27 = vpack.c.bf16 %v1775_v24, %v1773_v23  ;;  %v1782_v31 = vld [vmem:[%s3330_s4 + $0xc8] sm:$0xff]  ;;  %v1797_v60 = vld [vmem:[%s3330_s4 + $0x140] sm:$0xff] }
 0x4e0   :  { %v1447_v35 = vmul.f32 %v2628_v33, %v2898_v2  ;;  %v1763_v2 = vld [vmem:[%s3330_s4 + $0x30] sm:$0xff]  ;;  %v2437_v33 = vpack.c.bf16 %v1779_v30, %v1777_v29  ;;  %v1809_v29 = vld [vmem:[%s3330_s4 + $0x1a0] sm:$0xff] }
 0x4e1   :  { %2361 = vmatmul.mubr.msk.f32.vlgmr.msra.gmra.mrb[14].mxu1 %vm219_vm3, %v1264_v32  ;;  %2418 = vmatpush1.bf16.msra.mxu0 %v2417_v63  ;;  %v1784_v32 = vld [vmem:[%s3330_s4 + $0xd8] sm:$0xff]  ;;  %v1802_v63 = vld [vmem:[%s3330_s4 + $0x168] sm:$0xff]  ;;  %v1811_v30 = vld [vmem:[%s3330_s4 + $0x1b0] sm:$0xff] }
 0x4e2   :  { %2369 = vmatpush3.msra.mxu1 %v1449_v34  ;;  %2370 = vmatprep.mubr.msk.f32.mxu1 %vm2656_vm2, %v2655_v17  ;;  %v2630_v36 = vpop.eup %2629  ;;  %v2439_v34 = vpack.c.bf16 %v1784_v32, %v1782_v31  ;;  %v2469_v32 = vpack.c.bf16 %v1811_v30, %v1809_v29  ;;  %v1922_v29 = vld [vmem:[%s3332_s6 + $0x80] sm:$0xff]  ;;  %v1923_v30 = vld [vmem:[%s3332_s6 + $0x88] sm:$0xff] }
 0x4e3   :  { %2378 = vmatprep.subr.mxu1 %v2655_v17  ;;  %v1630_v38 = vmul.f32 %v2630_v36, %v2904_v5  ;;  %v2421_v5 = vpack.c.bf16 %v1763_v2, %v1761_v1  ;;  %2420 = vmatprep.subr.bf16.mxu0 %v2419_v0  ;;  %v1783_v36 = vld [vmem:[%s3330_s4 + $0xd0] sm:$0xff]  ;;  %v1804_v0 = vld [vmem:[%s3330_s4 + $0x178] sm:$0xff]  ;;  %v2457_v2 = vpack.c.bf16 %v1799_v61, %v1797_v60 }
 0x4e4   :  { %v2459_v4 = vpack.c.bf16 %v1804_v0, %v1802_v63  ;;  %v1907_v63 = vld [vmem:[%s3332_s6 + $0x8] sm:$0xff] }
 0x4e5   :  { %2371 = vmatmul.mubr.msk.f32.vlgmr.msra.gmra.mrb[16].mxu1 %vm219_vm3, %v1447_v35  ;;  %2422 = vmatpush1.bf16.msra.mxu0 %v2421_v5  ;;  %v1781_v35 = vld [vmem:[%s3330_s4 + $0xc0] sm:$0xff] }
 0x4e6   :  { %2379 = vmatpush3.msra.mxu1 %v1632_v37  ;;  %2380 = vmatprep.mubr.msk.f32.mxu1 %vm2656_vm2, %v2655_v17  ;;  %v1786_v37 = vld [vmem:[%s3330_s4 + $0xe8] sm:$0xff]  ;;  %v1801_v5 = vld [vmem:[%s3330_s4 + $0x160] sm:$0xff] }
 0x4e7   :  { %2424 = vmatprep.subr.bf16.mxu0 %v2423_v6  ;;  %v1803_v6 = vld [vmem:[%s3330_s4 + $0x170] sm:$0xff] }
 0x4e8   :  { %v2461_v7 = vpack.c.bf16 %v1803_v6, %v1801_v5  ;;  %v1908_v5 = vld [vmem:[%s3332_s6 + $0x10] sm:$0xff]  ;;  %v1909_v6 = vld [vmem:[%s3332_s6 + $0x18] sm:$0xff] }
 0x4e9   :  { %2381 = vmatmul.mubr.msk.f32.vlgmr.msra.gmra.mrb[18].mxu1 %vm219_vm3, %v1630_v38  ;;  %2426 = vmatpush1.bf16.msra.mxu0 %v2425_v11  ;;  %v1788_v38 = vld [vmem:[%s3330_s4 + $0xf8] sm:$0xff] }
 0x4ea   :  { %2428 = vmatprep.subr.bf16.mxu0 %v2427_v12  ;;  %v1808_v11 = vld [vmem:[%s3330_s4 + $0x198] sm:$0xff]  ;;  %v1805_v12 = vld [vmem:[%s3330_s4 + $0x180] sm:$0xff] }
 0x4eb   :  { %v2463_v15 = vpack.c.bf16 %v1808_v11, %v1806_v10  ;;  %v1912_v11 = vld [vmem:[%s3332_s6 + $0x30] sm:$0xff] }
 0x4ed   :  { %2430 = vmatpush1.bf16.msra.mxu0 %v2429_v18 }
 0x4ee   :  { %2432 = vmatprep.subr.bf16.mxu0 %v2431_v22 }
 0x4f1   :  { %2434 = vmatpush1.bf16.msra.mxu0 %v2433_v27 }
 0x4f2   :  { %2436 = vmatprep.subr.bf16.mxu0 %v2435_v28  ;;  %v2467_v28 = vpack.c.bf16 %v1812_v26, %v1810_v25  ;;  %v1920_v26 = vld [vmem:[%s3332_s6 + $0x70] sm:$0xff] }
 0x4f5   :  { %2438 = vmatpush1.bf16.msra.mxu0 %v2437_v33 }
 0x4f6   :  { %2440 = vmatprep.subr.bf16.mxu0 %v2439_v34  ;;  %v1814_v34 = vld [vmem:[%s3330_s4 + $0x1c8] sm:$0xff] }
 0x522   :  { %v392_v39 = vpop.f32.mrb[4].mxu1 }
 0x523   :  { %v2946_v40 = vadd.f32 %v392_v39, %v2796_v21  ;;  %v2312_v41 = vpop.f32.mrb[5].mxu1  ;;  %v2441_v39 = vpack.c.bf16 %v1783_v36, %v1781_v35  ;;  %v1816_v35 = vld [vmem:[%s3330_s4 + $0x1d8] sm:$0xff] }
 0x524   :  { %v2443_v41 = vpack.c.bf16 %v1788_v38, %v1786_v37 }
 0x525   :  { %2442 = vmatpush1.bf16.msra.mxu0 %v2441_v39  ;;  %v1815_v39 = vld [vmem:[%s3330_s4 + $0x1d0] sm:$0xff] }
 0x526   :  { %2444 = vmatprep.subr.bf16.mxu0 %v2443_v41 }
 0x577   :  { %v571_v19 = vpop.f32.mrb[6].mxu1 }
 0x578   :  { %576 = vrot.lane.b32.xlu0 %v571_v19, %s2664_s14  ;;  %v2322_v42 = vpop.f32.mrb[7].mxu1  ;;  %v1785_v19 = vld [vmem:[%s3330_s4 + $0xe0] sm:$0xff] }
 0x579   :  { %v1787_v42 = vld [vmem:[%s3330_s4 + $0xf0] sm:$0xff] }
 0x57b   :  { %v754_v43 = vpop.f32.mrb[8].mxu1 }
 0x57c   :  { %v2332_v44 = vpop.f32.mrb[9].mxu1 }
 0x57d   :  { %v1792_v44 = vld [vmem:[%s3330_s4 + $0x118] sm:$0xff] }
 0x57f   :  { %v937_v45 = vpop.f32.mrb[10].mxu1 }
 0x580   :  { %v2342_v46 = vpop.f32.mrb[11].mxu1 }
 0x5b0   :  { %v1158_v47 = vpop.f32.mrb[12].mxu1 }
 0x5b1   :  { %v2949_v48 = vadd.f32 %v2794_v20, %v1158_v47  ;;  %v2352_v49 = vpop.f32.mrb[13].mxu1  ;;  %v1789_v47 = vld [vmem:[%s3330_s4 + $0x100] sm:$0xff] }
 0x5b2   :  { %v1791_v49 = vld [vmem:[%s3330_s4 + $0x110] sm:$0xff] }
 0x5b4   :  { %v1337_v50 = vpop.f32.mrb[14].mxu1 }
 0x5b5   :  { %1342 = vrot.lane.b32.xlu0 %v1337_v50, %s2664_s14  ;;  %v2362_v51 = vpop.f32.mrb[15].mxu1  ;;  %v1794_v50 = vld [vmem:[%s3330_s4 + $0x128] sm:$0xff]  ;;  %s2670_s14 = smov [#allocation2]  }
 0x5b6   :  { %v1796_v51 = vld [vmem:[%s3330_s4 + $0x138] sm:$0xff] }
 0x5b8   :  { %v1520_v52 = vpop.f32.mrb[16].mxu1 }
 0x5b9   :  { %759 = vrot.lane.b32.xlu0 %v754_v43, %s2665_s15  ;;  %1525 = vrot.lane.b32.xlu1 %v1520_v52, %s2665_s15  ;;  %v2372_v53 = vpop.f32.mrb[17].mxu1  ;;  %v1790_v43 = vld [vmem:[%s3330_s4 + $0x108] sm:$0xff]  ;;  %v2449_v52 = vpack.c.bf16 %v1791_v49, %v1789_v47  ;;  %v1820_v49 = vld [vmem:[%s3330_s4 + $0x1f8] sm:$0xff]  ;;  %s2667_s15 = smov 64  }
 0x5ba   :  { %v2447_v46 = vpack.c.bf16 %v1792_v44, %v1790_v43  ;;  %v2451_v53 = vpack.c.bf16 %v1796_v51, %v1794_v50  ;;  %v2471_v44 = vpack.c.bf16 %v1816_v35, %v1814_v34  ;;  %v1818_v47 = vld [vmem:[%s3330_s4 + $0x1e8] sm:$0xff]  ;;  %v1817_v51 = vld [vmem:[%s3330_s4 + $0x1e0] sm:$0xff]  ;;  %v1925_v34 = vld [vmem:[%s3332_s6 + $0x98] sm:$0xff] }
 0x5bb   :  { %v2475_v56 = vpack.c.bf16 %v1820_v49, %v1818_v47 }
 0x5bc   :  { %v1703_v54 = vpop.f32.mrb[18].mxu1 }
 0x5bd   :  { %1708 = vrot.lane.b32.xlu1 %v1703_v54, %s2666_s16  ;;  %v2382_v55 = vpop.f32.mrb[19].mxu1  ;;  %v1793_v54 = vld [vmem:[%s3330_s4 + $0x120] sm:$0xff] }
 0x5be   :  { %v1795_v55 = vld [vmem:[%s3330_s4 + $0x130] sm:$0xff] }
 0x5bf   :  { %v2453_v58 = vpack.c.bf16 %v1795_v55, %v1793_v54 }
 0x5c1   :  { %942 = vrot.lane.b32.xlu1 %v937_v45, %s2666_s16  ;;  %v2445_v45 = vpack.c.bf16 %v1787_v42, %v1785_v19  ;;  %s2185_s16 = sshll.u32 %s2670_s14, 4  ;;  %s2186_s16 = int_to_ptr.vmem [resolvable:$true] %s2185_s16 }
 0x5c2   :  { %p2636_p1 = scmp.lt.s32.totalorder %s2186_s16, %s2186_s16 }
 0x5c3   :  { %2446 = vmatpush1.bf16.msra.mxu0 %v2445_v45 }
 0x5c4   :  { %2448 = vmatprep.subr.bf16.mxu0 %v2447_v46 }
 0x5c7   :  { %2450 = vmatpush1.bf16.msra.mxu0 %v2449_v52  ;;  %v1819_v52 = vld [vmem:[%s3330_s4 + $0x1f0] sm:$0xff] }
 0x5c8   :  { %2452 = vmatprep.subr.bf16.mxu0 %v2451_v53  ;;  %v2477_v60 = vpack.c.bf16 %v1819_v52, %v1817_v51 }
 0x5cb   :  { %2454 = vmatpush1.bf16.msra.mxu0 %v2453_v58 }
 0x5cc   :  { %2456 = vmatprep.subr.bf16.mxu0 %v2455_v59 }
 0x5cf   :  { %2458 = vmatpush1.bf16.msra.mxu0 %v2457_v2 }
 0x5d0   :  { %2460 = vmatprep.subr.bf16.mxu0 %v2459_v4 }
 0x5d3   :  { %2462 = vmatpush1.bf16.msra.mxu0 %v2461_v7  ;;  %v2483_v7 = vpack.c.bf16 %v1909_v6, %v1908_v5 }
 0x5d4   :  { %2464 = vmatprep.subr.bf16.mxu0 %v2463_v15  ;;  %v1915_v15 = vld [vmem:[%s3332_s6 + $0x48] sm:$0xff] }
 0x5ea   :  { %v577_v62 = vpop.permute.xlu0 %576 }
 0x5eb   :  { %v579_v1 = vadd.f32 %v577_v62, %v2796_v21  ;;  %v1906_v62 = vld [vmem:[%s3332_s6] sm:$0xff] }
 0x5ec   :  { %v2480_v4 = vpack.c.bf16 %v1907_v63, %v1906_v62 }
 0x5ed   :  { %v946_v3 = vsel %vm219_vm3, %v2946_v40, %v579_v1 }
 0x627   :  { %v1343_v8 = vpop.permute.xlu0 %1342 }
 0x628   :  { %v1345_v9 = vadd.f32 %v2794_v20, %v1343_v8 }
 0x62a   :  { %v1712_v40 = vsel %vm219_vm3, %v2949_v48, %v1345_v9  ;;  %v1807_v48 = vld [vmem:[%s3330_s4 + $0x190] sm:$0xff]  ;;  %v1910_v9 = vld [vmem:[%s3332_s6 + $0x20] sm:$0xff] }
 0x62b   :  { %v760_v13 = vpop.permute.xlu0 %759  ;;  %v1526_v14 = vpop.permute.xlu1 %1525  ;;  %v2465_v22 = vpack.c.bf16 %v1807_v48, %v1805_v12  ;;  %v1913_v12 = vld [vmem:[%s3332_s6 + $0x38] sm:$0xff] }
 0x62c   :  { %v762_v16 = vadd.f32 %v760_v13, %v2796_v21  ;;  %v1528_v18 = vadd.f32 %v2794_v20, %v1526_v14  ;;  %v2489_v13 = vpack.c.bf16 %v1913_v12, %v1912_v11  ;;  %v1914_v14 = vld [vmem:[%s3332_s6 + $0x40] sm:$0xff]  ;;  %v1823_v12 = vlaneseq }
 0x62d   :  { %2466 = vmatpush1.bf16.msra.mxu0 %v2465_v22  ;;  %v2492_v48 = vpack.c.bf16 %v1915_v15, %v1914_v14  ;;  %v1821_v15 = vld [vmem:[%s3331_s5] sm:$0x3] }
 0x62e   :  { %v948_v23 = vsel %vm947_vm4, %v946_v3, %v762_v16  ;;  %v1713_v24 = vsel %vm947_vm4, %v1712_v40, %v1528_v18  ;;  %2468 = vmatprep.subr.bf16.mxu0 %v2467_v28  ;;  %v2669_v3 = vmov 0.0|0.0   ;;  %v1911_v40 = vld [vmem:[%s3332_s6 + $0x28] sm:$0xff]  ;;  %v1916_v16 = vld [vmem:[%s3332_s6 + $0x50] sm:$0xff]  ;;  %v1917_v18 = vld [vmem:[%s3332_s6 + $0x58] sm:$0xff] }
 0x62f   :  { %v1709_v27 = vpop.permute.xlu1 %1708  ;;  %2479 = vmatprep.subr.bf16.mxu1 %v2669_v3  ;;  %v2486_v10 = vpack.c.bf16 %v1911_v40, %v1910_v9  ;;  %v2495_v22 = vpack.c.bf16 %v1917_v18, %v1916_v16  ;;  %v1928_v40 = vld [vmem:[%s3332_s6 + $0xb0] sm:$0xff] }
 0x630   :  { %v1711_v31 = vadd.f32 %v2794_v20, %v1709_v27  ;;  %v1813_v20 = vld [vmem:[%s3330_s4 + $0x1c0] sm:$0xff]  ;;  %2481 = vmatpush1.bf16.msra.mxu1 %v2480_v4  ;;  %v1921_v27 = vld [vmem:[%s3332_s6 + $0x78] sm:$0xff] }
 0x631   :  { %2470 = vmatpush1.bf16.msra.mxu0 %v2469_v32  ;;  %v2473_v45 = vpack.c.bf16 %v1815_v39, %v1813_v20  ;;  %2482 = vmatprep.subr.bf16.mxu1 %v2669_v3  ;;  %v2501_v28 = vpack.c.bf16 %v1921_v27, %v1920_v26  ;;  %v1924_v32 = vld [vmem:[%s3332_s6 + $0x90] sm:$0xff]  ;;  %v2012_v26 = vld [vmem:[%s3334_s8 + $0x8] sm:$0xff] }
 0x632   :  { %v3129_v33 = vsel %vm137_vm0, %v1713_v24, %v1711_v31  ;;  %2472 = vmatprep.subr.bf16.mxu0 %v2471_v44  ;;  %v1919_v24 = vld [vmem:[%s3332_s6 + $0x68] sm:$0xff]  ;;  %v2504_v31 = vpack.c.bf16 %v1923_v30, %v1922_v29  ;;  %v2507_v35 = vpack.c.bf16 %v1925_v34, %v1924_v32  ;;  %v2014_v32 = vld [vmem:[%s3334_s8 + $0x18] sm:$0xff] }
 0x633   :  { %v943_v36 = vpop.permute.xlu1 %942  ;;  %v1720_v37 = vrot.slane %v3129_v33, 2  ;;  %v1734_v38 = vrot.slane %v3129_v33, 6  ;;  %v1724_v19 = vrot.slane %v3129_v33, 3  ;;  %v1738_v42 = vrot.slane %v3129_v33, 7 }
 0x634   :  { %v945_v41 = vadd.f32 %v943_v36, %v2796_v21  ;;  %v1716_v54 = vrot.slane %v3129_v33, 1  ;;  %v1730_v55 = vrot.slane %v3129_v33, 5  ;;  %2484 = vmatpush1.bf16.msra.mxu1 %v2483_v7  ;;  %v1926_v7 = vld [vmem:[%s3332_s6 + $0xa0] sm:$0xff] }
 0x635   :  { %v2547_v43 = vpack.i.bf16 %v1720_v37, %v1734_v38  ;;  %v2552_v53 = vpack.i.bf16 %v1724_v19, %v1738_v42  ;;  %2474 = vmatpush1.bf16.msra.mxu0 %v2473_v45  ;;  %2485 = vmatprep.subr.bf16.mxu1 %v2669_v3  ;;  %v1728_v19 = vrot.slane %v3129_v33, 4 }
 0x636   :  { %v3149_v46 = vsel %vm137_vm0, %v948_v23, %v945_v41  ;;  %2476 = vmatprep.subr.bf16.mxu0 %v2475_v56  ;;  %v2542_v61 = vpack.i.bf16 %v1716_v54, %v1730_v55  ;;  %v1918_v23 = vld [vmem:[%s3332_s6 + $0x60] sm:$0xff] }
 0x637   :  { %2548 = vrot.lane.b32.xlu1 %v2547_v43, %s2667_s15  ;;  %v951_v21 = vrot.slane %v3149_v46, 1  ;;  %v965_v50 = vrot.slane %v3149_v46, 5  ;;  %v959_v58 = vrot.slane %v3149_v46, 3  ;;  %v973_v59 = vrot.slane %v3149_v46, 7 }
 0x638   :  { %v955_v1 = vrot.slane %v3149_v46, 2  ;;  %v969_v2 = vrot.slane %v3149_v46, 6  ;;  %2487 = vmatpush1.bf16.msra.mxu1 %v2486_v10  ;;  %v2498_v25 = vpack.c.bf16 %v1919_v24, %v1918_v23  ;;  %v963_v47 = vrot.slane %v3149_v46, 4  ;;  %v1929_v10 = vld [vmem:[%s3332_s6 + $0xb8] sm:$0xff] }
 0x639   :  { %v2537_v57 = vpack.i.bf16 %v951_v21, %v965_v50  ;;  %2478 = vmatpush1.bf16.msra.mxu0 %v2477_v60  ;;  %v2562_v0 = vpack.i.bf16 %v959_v58, %v973_v59  ;;  %2488 = vmatprep.subr.bf16.mxu1 %v2669_v3  ;;  %v2513_v11 = vpack.c.bf16 %v1929_v10, %v1928_v40 }
 0x63a   :  { %v2557_v8 = vpack.i.bf16 %v955_v1, %v969_v2 }
 0x63b   :  { %2553 = vrot.lane.b32.xlu1 %v2552_v53, %s2661_s29  ;;  %2538 = vrot.lane.b32.xlu0 %v2537_v57, %s2668_s20 }
 0x63c   :  { %2490 = vmatpush1.bf16.msra.mxu1 %v2489_v13  ;;  %v1824_v13 = vshrl.u32 %v1823_v12, 7 }
 0x63d   :  { %2491 = vmatprep.subr.bf16.mxu1 %v2669_v3 }
 0x63e   :  { %v1825_v14 = vsub.s32 0, %v1824_v13 }
 0x63f   :  { %2563 = vrot.lane.b32.xlu1 %v2562_v0, %s2661_s29  ;;  %2543 = vrot.lane.b32.xlu0 %v2542_v61, %s2668_s20 }
 0x640   :  { %2493 = vmatpush1.bf16.msra.mxu1 %v2492_v48  ;;  %v1829_v48 = vsub.s32 1, %v1824_v13  ;;  %v1826_v16 = vrot.slane %v1821_v15, %v1825_v14 }
 0x641   :  { %2494 = vmatprep.subr.bf16.mxu1 %v2669_v3 }
 0x642   :  { %v1830_v18 = vrot.slane %v1821_v15, %v1829_v48 }
 0x643   :  { %2558 = vrot.lane.b32.xlu0 %v2557_v8, %s2667_s15  ;;  %v1927_v8 = vld [vmem:[%s3332_s6 + $0xa8] sm:$0xff] }
 0x644   :  { %2496 = vmatpush1.bf16.msra.mxu1 %v2495_v22  ;;  %v2510_v9 = vpack.c.bf16 %v1927_v8, %v1926_v7 }
 0x645   :  { %2497 = vmatprep.subr.bf16.mxu1 %v2669_v3 }
 0x648   :  { %2499 = vmatpush1.bf16.msra.mxu1 %v2498_v25  ;;  %v2011_v25 = vld [vmem:[%s3334_s8] sm:$0xff] }
 0x649   :  { %2500 = vmatprep.subr.bf16.mxu1 %v2669_v3  ;;  %v2516_v29 = vpack.c.bf16 %v2012_v26, %v2011_v25 }
 0x64c   :  { %2502 = vmatpush1.bf16.msra.mxu1 %v2501_v28 }
 0x64d   :  { %2503 = vmatprep.subr.bf16.mxu1 %v2669_v3 }
 0x650   :  { %2505 = vmatpush1.bf16.msra.mxu1 %v2504_v31  ;;  %v2013_v31 = vld [vmem:[%s3334_s8 + $0x10] sm:$0xff] }
 0x651   :  { %2506 = vmatprep.subr.bf16.mxu1 %v2669_v3  ;;  %v2519_v34 = vpack.c.bf16 %v2014_v32, %v2013_v31 }
 0x654   :  { %2508 = vmatpush1.bf16.msra.mxu1 %v2507_v35  ;;  %v2221_v35 = vld [vmem:[%s3333_s7] ss:$0 sm:$0xff] }
 0x655   :  { %2509 = vmatprep.subr.bf16.mxu1 %v2669_v3 }
 0x658   :  { %2511 = vmatpush1.bf16.msra.mxu1 %v2510_v9 }
 0x659   :  { %2512 = vmatprep.subr.bf16.mxu1 %v2669_v3 }
 0x65c   :  { %2514 = vmatpush1.bf16.msra.mxu1 %v2513_v11 }
 0x65d   :  { %2515 = vmatprep.subr.bf16.mxu1 %v2669_v3 }
 0x6a9   :  { %v2549_v36 = vpop.permute.xlu1 %2548 }
 0x6aa   :  { %v2551_v44 = vunpack.i.h.bf16 %v2549_v36  ;;  %v2550_v45 = vunpack.i.l.bf16 %v2549_v36 }
 0x6ad   :  { %v2539_v37 = vpop.permute.xlu0 %2538  ;;  %v2554_v38 = vpop.permute.xlu1 %2553 }
 0x6ae   :  { %v2541_v20 = vunpack.i.h.bf16 %v2539_v37  ;;  %v2540_v39 = vunpack.i.l.bf16 %v2539_v37  ;;  %v2556_v49 = vunpack.i.h.bf16 %v2554_v38  ;;  %v2555_v21 = vunpack.i.l.bf16 %v2554_v38 }
 0x6b0   :  { %v978_v53 = vsel %vm977_vm5, %v3149_v46, %v2541_v20  ;;  %v983_v54 = vsel %vm977_vm5, %v963_v47, %v2540_v39  ;;  %v2096_v20 = vld [vmem:[%s3336_s10] sm:$0xff]  ;;  %s2631_s10 = scalar_lea.vmem %s2186_s16, 32 }
 0x6b1   :  { %v2544_v41 = vpop.permute.xlu0 %2543  ;;  %v2564_v52 = vpop.permute.xlu1 %2563  ;;  %v2223_v39 = vld [vmem:[%s3335_s9] ss:$0 sm:$0xff]  ;;  %p2632_p0 = scmp.ne.s32.totalorder %s2186_s16, %s2631_s10  ;;  %p2637_p2 = scmp.lt.s32.totalorder %s2631_s10, %s2631_s10 }
 0x6b2   :  { %v2546_v42 = vunpack.i.h.bf16 %v2544_v41  ;;  %v2545_v43 = vunpack.i.l.bf16 %v2544_v41  ;;  %v2565_v62 = vunpack.i.l.bf16 %v2564_v52 }
 0x6b3   :  { %p2638_p3 = por %p2637_p2, %p2636_p1 }
 0x6b4   :  { %v1742_v50 = vsel %vm977_vm5, %v3129_v33, %v2546_v42  ;;  %v1745_v51 = vsel %vm977_vm5, %v1728_v19, %v2545_v43  ;;  %v2566_v33 = vunpack.i.h.bf16 %v2564_v52 }
 0x6b5   :  { %v1743_v55 = vsel %vm979_vm6, %v1742_v50, %v2551_v44  ;;  %v1746_v56 = vsel %vm979_vm6, %v1745_v51, %v2550_v45  ;;  %v2559_v57 = vpop.permute.xlu0 %2558  ;;  %v2225_v44 = vld [vmem:[%s3337_s11] ss:$0 sm:$0xff]  ;;  %p2639_p4 = pnand %p2638_p3, %p2632_p0 }
 0x6b6   :  { %v2561_v58 = vunpack.i.h.bf16 %v2559_v57  ;;  %v2560_v59 = vunpack.i.l.bf16 %v2559_v57  ;;  %v1747_v60 = vsel %vm981_vm7, %v1746_v56, %v2555_v21  ;;  %v1744_v61 = vsel %vm981_vm7, %v1743_v55, %v2556_v49 }
 0x6b7   :  { %v1751_v63 = vrot.slane %v1747_v60, 7  ;;  %v1750_v0 = vrot.slane %v1744_v61, 7 }
 0x6b8   :  { %v980_v1 = vsel %vm979_vm6, %v978_v53, %v2561_v58  ;;  %v984_v46 = vsel %vm979_vm6, %v983_v54, %v2560_v59 }
 0x6b9   :  { %v985_v2 = vsel %vm981_vm7, %v984_v46, %v2565_v62  ;;  %v982_v4 = vsel %vm981_vm7, %v980_v1, %v2566_v33 }
 0x6ba   :  { %v1756_v5 = vsel %vm1754_vm8, %v985_v2, %v1751_v63  ;;  %v1755_v6 = vsel %vm1754_vm8, %v982_v4, %v1750_v0 }
 0x6bb   :  { %1897 = vmatprep.mubr.f32.mxu0 %v1756_v5 }
 0x6bc   :  { %1898 = vmatmul.mubr.f32.vlgmr.msra.gmra.mrb[16].mxu0 %v1755_v6 }
 0x78f   :  { %v1899_v22 = vpop.f32.mrb[16].mxu0 }
 0x790   :  { %v1900_v23 = vadd.f32 %v1899_v22, %v1826_v16  ;;  %v1901_v24 = vpop.f32.mrb[17].mxu0 }
 0x791   :  { %v1902_v27 = vadd.f32 %v1901_v24, %v1830_v18 }
 0x792   :  { %v1904_v30 = vmax.f32 %v1900_v23, 0.0 }
 0x793   :  { %v1905_v28 = vmax.f32 %v1902_v27, 0.0 }
 0x795   :  { %2222 = vmatprep.mubr.msk.f32.mxu1 %vm979_vm6, %v1905_v28 }
 0x796   :  { %2005 = vmatmul.mubr.f32.vlgmr.msra.gmra.mrb[20].mxu1 %v1904_v30 }
 0x797   :  { %2517 = vmatpush3.bf16.msra.mxu1 %v2516_v29  ;;  %2391 = vmatprep.mubr.msk.f32.mxu1 %vm2656_vm2, %v2655_v17 }
 0x798   :  { %2518 = vmatprep.subr.bf16.mxu1 %v2669_v3 }
 0x79b   :  { %2520 = vmatpush3.bf16.msra.mxu1 %v2519_v34 }
 0x79c   :  { %2394 = vmatprep.subr.mxu1 %v2655_v17 }
 0x869   :  { %v2006_v36 = vpop.f32.mrb[20].mxu1 }
 0x86a   :  { %v2007_v37 = vadd.f32 %v2221_v35, %v2006_v36  ;;  %v2008_v38 = vpop.f32.mrb[21].mxu1 }
 0x86c   :  { %v2010_v3 = vmax.f32 %v2007_v37, 0.0 }
 0x86e   :  { %2392 = vmatmul.mubr.msk.f32.vlgmr.msra.gmra.mrb[22].mxu1 %vm977_vm5, %v2010_v3 }
 0x86f   :  { %2396 = vmatprep.mubr.msk.f32.mxu1 %vm2656_vm2, %v2655_v17  ;;  %2395 = vmatpush3.msra.mxu1 %v2096_v20 }
 0x941   :  { %v2091_v41 = vpop.f32.mrb[22].mxu1 }
 0x942   :  { %v2092_v19 = vadd.f32 %v2223_v39, %v2091_v41  ;;  %v2393_v42 = vpop.f32.mrb[23].mxu1 }
 0x944   :  { %v2095_v43 = vmax.f32 %v2092_v19, 0.0 }
 0x946   :  { %2397 = vmatmul.mubr.msk.f32.vlgmr.msra.gmra.mrb[24].mxu1 %vm219_vm3, %v2095_v43 }
 0xa19   :  { %v2173_v17 = vpop.f32.mrb[24].mxu1 }
 0xa1a   :  { %v2174_v45 = vadd.f32 %v2225_v44, %v2173_v17  ;;  %v2398_v47 = vpop.f32.mrb[25].mxu1 }
 0xa1c   :  { %2178 = vst.msk [vmem:[#allocation2] sm:$0x3] %vm2177_vm9, %v2174_v45 }
 0xa1d   :  { %2642 = shalt.err (!%p2639_p4)
}
 0xa1e   :  { %s2643_s17 = scalar_lea.hbm %s3338_s12, 32 }
 0xa1f   :  { %p2644_p5 = scmp.ne.s32.totalorder %s3338_s12, %s2643_s17  ;;  %p2647_p6 = scmp.lt.u32.totalorder %s2643_s17, %s3338_s12 }
 0xa21   :  { %p2649_p7 = pnand %p2647_p6, %p2644_p5 }
 0xa23   :  { %2652 = shalt.err (!%p2649_p7)
}
 0xa24   :  { %2188 = dma.vmem_to_hbm [thread:$0]  %s2186_s16, 32, %s3338_s12, [#allocation3]  }
 0xa25   :  { %2653 = dma.done.wait [#allocation3], 32  }
 0xa26   :  { %2654 = vsyncadd [#allocation3], 4294967264 }
 0xa27   :  { %2192 = vsyncpa [#allocation3], 1 }

</bundles_post_ra>
